<compile_context>
chip_gen: v5e
topology: v5e:2x2
jax: 0.10.0
libtpu: 0.0.40
codegen_flags: <defaults>
</compile_context>

<pallas_src>
import inspect

import jax
import jax.numpy as jnp
from jax.experimental import pallas as pl
from jax.experimental.pallas import tpu as pltpu


# ---------------------------------------------------------------------------
# Capability probe: does this jax expose BlockSpec(pipeline_mode=pl.Buffered)?
# ---------------------------------------------------------------------------
try:
    _HAS_PIPELINE_MODE = (
        hasattr(pl, "Buffered")
        and "pipeline_mode" in inspect.signature(pl.BlockSpec).parameters
    )
except Exception:  # pragma: no cover - very old/odd jax builds
    _HAS_PIPELINE_MODE = False


def _make_kernel(compute_dtype):
    def kernel(x_ref, w1_ref, b1_ref, w2_ref, b2_ref, o_ref, h_ref):
        # Layer 1 runs once per batch tile (first output-column step); the
        # bf16 hidden activation stays resident in VMEM scratch for all
        # output-column steps of that batch tile.
        @pl.when(pl.program_id(1) == 0)
        def _():
            h = jnp.dot(
                x_ref[...].astype(compute_dtype),       # in-kernel VPU cast
                w1_ref[...].astype(compute_dtype),
                preferred_element_type=jnp.float32,      # f32 MXU accumulation
            )
            h_ref[...] = jnp.maximum(h + b1_ref[...], 0.0).astype(h_ref.dtype)

        # Layer 2 for the current output-column tile (full F when not tiled).
        y = jnp.dot(
            h_ref[...],
            w2_ref[...].astype(compute_dtype),
            preferred_element_type=jnp.float32,
        )
        o_ref[...] = jnp.maximum(y + b2_ref[...], 0.0).astype(o_ref.dtype)

    return kernel


def _tpu_params():
    """Best-effort (vmem_capacity_bytes, vmem_budget_bytes, min_batch_steps)."""
    vmem_cap = None
    try:
        info = pltpu.get_tpu_info()
        for name in ("vmem_capacity_bytes", "vmem_size_bytes", "vmem_bytes"):
            v = getattr(info, name, None)
            if v:
                vmem_cap = int(v)
                break
    except Exception:
        pass
    kind = ""
    try:
        kind = str(jax.devices()[0].device_kind).lower()
    except Exception:
        pass
    is_v7 = ("v7" in kind) or ("7x" in kind)
    if vmem_cap is None:
        vmem_cap = (64 << 20) if is_v7 else (128 << 20)
    two_tensorcores = is_v7 or vmem_cap <= (64 << 20)
    # Leave headroom for compiler-internal scratch; ~48 MiB on v7x, ~96 MiB on
    # the 128 MiB-VMEM parts (v5e/v6e).
    budget = min((vmem_cap * 3) // 4, 100 << 20)
    min_steps = 2 if two_tensorcores else 1   # one batch tile per TensorCore
    return vmem_cap, budget, min_steps


def _choose_tiles(B, F, H, *, budget, min_steps, x_isz=4, w_isz=4):
    """Pick (tb, tf): batch-row tile and output-feature-column tile."""

    def round_rows(tb):
        tb = min(tb, B)
        if tb >= B:
            return B
        return min(max((tb // 8) * 8, 8), B)   # sublane alignment only

    def cost(tb, tf):
        n_f = -(-F // tf)
        fixed = F * H * w_isz + H * 4                        # resident W1 + b1
        w2_bufs = 2 if n_f > 1 else 1                        # W2/b2 stream when F-tiled
        fixed += w2_bufs * (H * tf * w_isz + tf * 4)
        per_row = (2 * F * x_isz                             # x tile (double-buffered)
                   + 2 * tf * 4                              # out tile (double-buffered)
                   + H * 2                                    # bf16 hidden scratch
                   + (H + tf + F) * 4)                        # f32 temporaries headroom
        return fixed + tb * per_row

    # Single grid step on single-TC chips; two balanced tiles on v7x.
    tb = round_rows(-(-B // min_steps))
    tf = F
    # Shrink the output-column tile first (keeps batch tiles big and the output
    # lane-dense), then the batch tile, until the working set fits VMEM.
    while cost(tb, tf) > budget and tf > 128:
        tf = max(((tf // 2) // 128) * 128, 128)
    while cost(tb, tf) > budget and tb > 8:
        tb = round_rows(tb // 2)
    # TODO(synk): if W1 alone (feaDim*hiddenDim) still exceeds the VMEM budget,
    # a third reduction grid axis over layer-1's input features is needed.
    return tb, tf


def autorec_forward(x, w1_t, b1, w2_t, b2, *, tb=None, tf=None,
                    compute_dtype=jnp.bfloat16):
    """AutoRec forward: ReLU(ReLU(x @ W1^T + b1) @ W2^T + b2).

    x: (B, F); w1_t: (F, H) (= W1^T); b1: (H,)/(1, H); w2_t: (H, F) (= W2^T);
    b2: (F,)/(1, F).  Returns (B, F) float32.
    """
    B, F = x.shape
    H = w1_t.shape[1]

    b1_r = jnp.asarray(b1, jnp.float32).reshape(1, H)
    b2_r = jnp.asarray(b2, jnp.float32).reshape(1, F)

    x_isz = jnp.dtype(x.dtype).itemsize
    w_isz = jnp.dtype(w1_t.dtype).itemsize
    c_isz = jnp.dtype(compute_dtype).itemsize

    vmem_cap, budget, min_steps = _tpu_params()
    if tb is None or tf is None:
        tb_auto, tf_auto = _choose_tiles(B, F, H, budget=budget,
                                         min_steps=min_steps,
                                         x_isz=x_isz, w_isz=w_isz)
        tb = tb_auto if tb is None else tb
        tf = tf_auto if tf is None else tf

    n_b = pl.cdiv(B, tb)
    n_f = pl.cdiv(F, tf)
    grid = (n_b, n_f)

    flops = 4 * B * F * H
    bytes_accessed = (B * F * x_isz + 2 * F * H * w_isz + (H + F) * 4
                      + B * F * 4)

    kernel = _make_kernel(compute_dtype)

    def build(single_buffer_residents):
        use_sb = single_buffer_residents and _HAS_PIPELINE_MODE

        def spec(shape, index_map, resident=False):
            if resident and use_sb:
                return pl.BlockSpec(shape, index_map,
                                    pipeline_mode=pl.Buffered(1))
            return pl.BlockSpec(shape, index_map)

        in_specs = [
            pl.BlockSpec((tb, F), lambda i, j: (i, 0)),            # x batch tile
            spec((F, H), lambda i, j: (0, 0), resident=True),      # W1^T (resident)
            spec((1, H), lambda i, j: (0, 0), resident=True),      # b1
            spec((H, tf), lambda i, j: (0, j), resident=(n_f == 1)),  # W2^T tile
            spec((1, tf), lambda i, j: (0, j), resident=(n_f == 1)),  # b2 tile
        ]
        out_specs = pl.BlockSpec((tb, tf), lambda i, j: (i, j))

        res_bufs = 1 if use_sb else 2
        w2_bufs = 2 if n_f > 1 else res_bufs
        est = (2 * tb * F * x_isz                 # x tiles (double-buffered)
               + res_bufs * (F * H * w_isz + H * 4)
               + w2_bufs * (H * tf * w_isz + tf * 4)
               + 2 * tb * tf * 4                  # out tiles (double-buffered)
               + tb * H * c_isz                   # hidden scratch
               + tb * (H + tf + F) * 4            # f32 temporaries headroom
               + (2 << 20))                       # slack
        vmem_limit = int(min(max(est, 16 << 20), vmem_cap - (4 << 20)))

        return pl.pallas_call(
            kernel,
            out_shape=jax.ShapeDtypeStruct((B, F), jnp.float32),
            grid_spec=pltpu.PrefetchScalarGridSpec(
                num_scalar_prefetch=0,
                grid=grid,
                in_specs=in_specs,
                out_specs=out_specs,
                scratch_shapes=[pltpu.VMEM((tb, H), compute_dtype)],
            ),
            compiler_params=pltpu.CompilerParams(
                # batch tiles shard across TensorCores on v7x; the F axis
                # carries the hidden-activation scratch -> "arbitrary".
                dimension_semantics=("parallel", "arbitrary"),
                vmem_limit_bytes=vmem_limit,
            ),
            cost_estimate=pl.CostEstimate(
                flops=flops, transcendentals=0,
                bytes_accessed=bytes_accessed),
        )

    args = (x, w1_t, b1_r, w2_t, b2_r)
    try:
        return build(True)(*args)
    except Exception:
        # Fallback for jax builds where Buffered(1) residents are rejected.
        return build(False)(*args)


def init_params(key, fea_dim, hidden_dim, dtype=jnp.float32):
    """Deterministic init matching nn.Linear shapes (Kaiming-uniform-ish bounds)."""
    k1, k2, k3, k4 = jax.random.split(key, 4)
    bound1 = 1.0 / (fea_dim ** 0.5)
    bound2 = 1.0 / (hidden_dim ** 0.5)
    # PyTorch stores W1 as (hiddenDim, feaDim); we keep the transposed layout.
    w1_t = jax.random.uniform(k1, (fea_dim, hidden_dim), dtype, -bound1, bound1)
    b1 = jax.random.uniform(k2, (1, hidden_dim), dtype, -bound1, bound1)
    # W2 stored as (feaDim, hiddenDim) in torch; transposed -> (hiddenDim, feaDim).
    w2_t = jax.random.uniform(k3, (hidden_dim, fea_dim), dtype, -bound2, bound2)
    b2 = jax.random.uniform(k4, (1, fea_dim), dtype, -bound2, bound2)
    return w1_t, b1, w2_t, b2


if __name__ == "__main__":
    batch = 256       # batchSize
    fea_dim = 256     # feaDim
    hidden_dim = 128  # hiddenDim

    key = jax.random.PRNGKey(0)
    kx, kp = jax.random.split(key)
    x = jax.random.normal(kx, (batch, fea_dim), jnp.float32)
    w1_t, b1, w2_t, b2 = init_params(kp, fea_dim, hidden_dim)

    out = autorec_forward(x, w1_t, b1, w2_t, b2)
    out = jax.block_until_ready(out)

    # Pure-JAX reference with the same bf16-operand / f32-accumulate semantics.
    cdt = jnp.bfloat16
    h_ref = jnp.maximum(
        jnp.dot(x.astype(cdt), w1_t.astype(cdt),
                preferred_element_type=jnp.float32)
        + b1.reshape(1, -1).astype(jnp.float32), 0.0)
    ref = jnp.maximum(
        jnp.dot(h_ref.astype(cdt), w2_t.astype(cdt),
                preferred_element_type=jnp.float32)
        + b2.reshape(1, -1).astype(jnp.float32), 0.0)

    assert out.shape == (batch, fea_dim)
    assert out.dtype == jnp.float32
    assert jnp.allclose(out, ref, atol=2e-2, rtol=2e-2)

    print("KERNEL_OK")
</pallas_src>

<mosaic_0001>
module attributes {stable_mosaic.version = 11 : i64} {
  func.func @kernel(%arg0: i32, %arg1: i32, %arg2: memref<256x256xf32, #tpu.memory_space<vmem>>, %arg3: memref<256x128xf32, #tpu.memory_space<vmem>>, %arg4: memref<1x128xf32, #tpu.memory_space<vmem>>, %arg5: memref<128x256xf32, #tpu.memory_space<vmem>>, %arg6: memref<1x256xf32, #tpu.memory_space<vmem>>, %arg7: memref<256x256xf32, #tpu.memory_space<vmem>>, %arg8: memref<256x128xbf16, #tpu.memory_space<vmem>>) attributes {dimension_semantics = [#tpu.dimension_semantics<parallel>, #tpu.dimension_semantics<arbitrary>], iteration_bounds = array<i64: 1, 1>, scalar_prefetch = 0 : i64, scratch_operands = 1 : i64, tpu.core_type = #tpu.core_type<tc>, window_params = [{transform_indices = @transform_0, window_bounds = array<i64: 256, 256>}, {pipeline_mode = #tpu.pipeline_mode<synchronous>, transform_indices = @transform_1, window_bounds = array<i64: 256, 128>}, {pipeline_mode = #tpu.pipeline_mode<synchronous>, transform_indices = @transform_2, window_bounds = array<i64: 1, 128>}, {pipeline_mode = #tpu.pipeline_mode<synchronous>, transform_indices = @transform_3, window_bounds = array<i64: 128, 256>}, {pipeline_mode = #tpu.pipeline_mode<synchronous>, transform_indices = @transform_4, window_bounds = array<i64: 1, 256>}, {transform_indices = @transform_5, window_bounds = array<i64: 256, 256>}]} {
    %c0_i32 = arith.constant 0 : i32
    %0 = arith.cmpi eq, %arg1, %c0_i32 : i32
    %1 = arith.extui %0 : i1 to i32
    %c0_i32_0 = arith.constant 0 : i32
    %2 = arith.cmpi ne, %1, %c0_i32_0 : i32
    scf.if %2 {
      %c0_9 = arith.constant 0 : index
      %c0_10 = arith.constant 0 : index
      %13 = vector.load %arg2[%c0_9, %c0_10] : memref<256x256xf32, #tpu.memory_space<vmem>>, vector<256x256xf32>
      %14 = arith.truncf %13 : vector<256x256xf32> to vector<256x256xbf16>
      %c0_11 = arith.constant 0 : index
      %c0_12 = arith.constant 0 : index
      %15 = vector.load %arg3[%c0_11, %c0_12] : memref<256x128xf32, #tpu.memory_space<vmem>>, vector<256x128xf32>
      %16 = arith.truncf %15 : vector<256x128xf32> to vector<256x128xbf16>
      %cst_13 = arith.constant dense<0.000000e+00> : vector<256x128xf32>
      %17 = tpu.matmul %14, %16, %cst_13 {dimension_numbers = #tpu.dot_dimension_numbers<[1], [0], [0], [1], [0, 0, 1, 1], [], []>} : vector<256x256xbf16>, vector<256x128xbf16>, vector<256x128xf32> -> vector<256x128xf32>
      %c0_14 = arith.constant 0 : index
      %c0_15 = arith.constant 0 : index
      %18 = vector.load %arg4[%c0_14, %c0_15] : memref<1x128xf32, #tpu.memory_space<vmem>>, vector<1x128xf32>
      %19 = vector.broadcast %18 : vector<1x128xf32> to vector<256x128xf32>
      %20 = arith.addf %17, %19 : vector<256x128xf32>
      %cst_16 = arith.constant 0.000000e+00 : f32
      %21 = vector.broadcast %cst_16 : f32 to vector<256x128xf32>
      %22 = arith.maximumf %20, %21 : vector<256x128xf32>
      %23 = arith.truncf %22 : vector<256x128xf32> to vector<256x128xbf16>
      %c0_17 = arith.constant 0 : index
      %c0_18 = arith.constant 0 : index
      %24 = vector.load %arg8[%c0_17, %c0_18] : memref<256x128xbf16, #tpu.memory_space<vmem>>, vector<256x128xbf16>
      tpu.vector_store %arg8[%c0_17, %c0_18], %23 {strides = array<i32>} : memref<256x128xbf16, #tpu.memory_space<vmem>>, vector<256x128xbf16>,
    } else {
    }
    %c0 = arith.constant 0 : index
    %c0_1 = arith.constant 0 : index
    %3 = vector.load %arg8[%c0, %c0_1] : memref<256x128xbf16, #tpu.memory_space<vmem>>, vector<256x128xbf16>
    %c0_2 = arith.constant 0 : index
    %c0_3 = arith.constant 0 : index
    %4 = vector.load %arg5[%c0_2, %c0_3] : memref<128x256xf32, #tpu.memory_space<vmem>>, vector<128x256xf32>
    %5 = arith.truncf %4 : vector<128x256xf32> to vector<128x256xbf16>
    %cst = arith.constant dense<0.000000e+00> : vector<256x256xf32>
    %6 = tpu.matmul %3, %5, %cst {dimension_numbers = #tpu.dot_dimension_numbers<[1], [0], [0], [1], [0, 0, 1, 1], [], []>} : vector<256x128xbf16>, vector<128x256xbf16>, vector<256x256xf32> -> vector<256x256xf32>
    %c0_4 = arith.constant 0 : index
    %c0_5 = arith.constant 0 : index
    %7 = vector.load %arg6[%c0_4, %c0_5] : memref<1x256xf32, #tpu.memory_space<vmem>>, vector<1x256xf32>
    %8 = vector.broadcast %7 : vector<1x256xf32> to vector<256x256xf32>
    %9 = arith.addf %6, %8 : vector<256x256xf32>
    %cst_6 = arith.constant 0.000000e+00 : f32
    %10 = vector.broadcast %cst_6 : f32 to vector<256x256xf32>
    %11 = arith.maximumf %9, %10 : vector<256x256xf32>
    %c0_7 = arith.constant 0 : index
    %c0_8 = arith.constant 0 : index
    %12 = vector.load %arg7[%c0_7, %c0_8] : memref<256x256xf32, #tpu.memory_space<vmem>>, vector<256x256xf32>
    tpu.vector_store %arg7[%c0_7, %c0_8], %11 {strides = array<i32>} : memref<256x256xf32, #tpu.memory_space<vmem>>, vector<256x256xf32>,
    return
  }
  func.func @transform_0(%arg0: i32, %arg1: i32) -> (i32, i32) {
    %c0_i32 = arith.constant 0 : i32
    %c0_i32_0 = arith.constant 0 : i32
    return %arg0, %c0_i32 : i32, i32
  }
  func.func @transform_1(%arg0: i32, %arg1: i32) -> (i32, i32) {
    %c0_i32 = arith.constant 0 : i32
    %c0_i32_0 = arith.constant 0 : i32
    %c0_i32_1 = arith.constant 0 : i32
    return %c0_i32, %c0_i32_0 : i32, i32
  }
  func.func @transform_2(%arg0: i32, %arg1: i32) -> (i32, i32) {
    %c0_i32 = arith.constant 0 : i32
    %c0_i32_0 = arith.constant 0 : i32
    %c0_i32_1 = arith.constant 0 : i32
    return %c0_i32, %c0_i32_0 : i32, i32
  }
  func.func @transform_3(%arg0: i32, %arg1: i32) -> (i32, i32) {
    %c0_i32 = arith.constant 0 : i32
    %c0_i32_0 = arith.constant 0 : i32
    return %c0_i32, %arg1 : i32, i32
  }
  func.func @transform_4(%arg0: i32, %arg1: i32) -> (i32, i32) {
    %c0_i32 = arith.constant 0 : i32
    %c0_i32_0 = arith.constant 0 : i32
    return %c0_i32, %arg1 : i32, i32
  }
  func.func @transform_5(%arg0: i32, %arg1: i32) -> (i32, i32) {
    %c0_i32 = arith.constant 0 : i32
    return %arg0, %arg1 : i32, i32
  }
}

module attributes {stable_mosaic.version = 11 : i64} {
  func.func @kernel(%arg0: i32, %arg1: i32, %arg2: memref<256x256xf32, #tpu.memory_space<vmem>>, %arg3: memref<256x128xf32, #tpu.memory_space<vmem>>, %arg4: memref<1x128xf32, #tpu.memory_space<vmem>>, %arg5: memref<128x256xf32, #tpu.memory_space<vmem>>, %arg6: memref<1x256xf32, #tpu.memory_space<vmem>>, %arg7: memref<256x256xf32, #tpu.memory_space<vmem>>, %arg8: memref<256x128xbf16, #tpu.memory_space<vmem>>) attributes {dimension_semantics = [#tpu.dimension_semantics<parallel>, #tpu.dimension_semantics<arbitrary>], iteration_bounds = array<i64: 1, 1>, scalar_prefetch = 0 : i64, scratch_operands = 1 : i64, tpu.core_type = #tpu.core_type<tc>, window_params = [{transform_indices = @transform_0, window_bounds = array<i64: 256, 256>}, {pipeline_mode = #tpu.pipeline_mode<synchronous>, transform_indices = @transform_1, window_bounds = array<i64: 256, 128>}, {pipeline_mode = #tpu.pipeline_mode<synchronous>, transform_indices = @transform_2, window_bounds = array<i64: 1, 128>}, {transform_indices = @transform_3, window_bounds = array<i64: 128, 256>}, {transform_indices = @transform_4, window_bounds = array<i64: 1, 256>}, {transform_indices = @transform_5, window_bounds = array<i64: 256, 256>}]} {
    %c0_i32 = arith.constant 0 : i32
    %0 = arith.cmpi eq, %arg1, %c0_i32 : i32
    %1 = arith.extui %0 : i1 to i32
    %c0_i32_0 = arith.constant 0 : i32
    %2 = arith.cmpi ne, %1, %c0_i32_0 : i32
    scf.if %2 {
      %c0_9 = arith.constant 0 : index
      %c0_10 = arith.constant 0 : index
      %13 = vector.load %arg2[%c0_9, %c0_10] : memref<256x256xf32, #tpu.memory_space<vmem>>, vector<256x256xf32>
      %14 = arith.truncf %13 : vector<256x256xf32> to vector<256x256xbf16>
      %c0_11 = arith.constant 0 : index
      %c0_12 = arith.constant 0 : index
      %15 = vector.load %arg3[%c0_11, %c0_12] : memref<256x128xf32, #tpu.memory_space<vmem>>, vector<256x128xf32>
      %16 = arith.truncf %15 : vector<256x128xf32> to vector<256x128xbf16>
      %cst_13 = arith.constant dense<0.000000e+00> : vector<256x128xf32>
      %17 = tpu.matmul %14, %16, %cst_13 {dimension_numbers = #tpu.dot_dimension_numbers<[1], [0], [0], [1], [0, 0, 1, 1], [], []>} : vector<256x256xbf16>, vector<256x128xbf16>, vector<256x128xf32> -> vector<256x128xf32>
      %c0_14 = arith.constant 0 : index
      %c0_15 = arith.constant 0 : index
      %18 = vector.load %arg4[%c0_14, %c0_15] : memref<1x128xf32, #tpu.memory_space<vmem>>, vector<1x128xf32>
      %19 = vector.broadcast %18 : vector<1x128xf32> to vector<256x128xf32>
      %20 = arith.addf %17, %19 : vector<256x128xf32>
      %cst_16 = arith.constant 0.000000e+00 : f32
      %21 = vector.broadcast %cst_16 : f32 to vector<256x128xf32>
      %22 = arith.maximumf %20, %21 : vector<256x128xf32>
      %23 = arith.truncf %22 : vector<256x128xf32> to vector<256x128xbf16>
      %c0_17 = arith.constant 0 : index
      %c0_18 = arith.constant 0 : index
      %24 = vector.load %arg8[%c0_17, %c0_18] : memref<256x128xbf16, #tpu.memory_space<vmem>>, vector<256x128xbf16>
      tpu.vector_store %arg8[%c0_17, %c0_18], %23 {strides = array<i32>} : memref<256x128xbf16, #tpu.memory_space<vmem>>, vector<256x128xbf16>,
    } else {
    }
    %c0 = arith.constant 0 : index
    %c0_1 = arith.constant 0 : index
    %3 = vector.load %arg8[%c0, %c0_1] : memref<256x128xbf16, #tpu.memory_space<vmem>>, vector<256x128xbf16>
    %c0_2 = arith.constant 0 : index
    %c0_3 = arith.constant 0 : index
    %4 = vector.load %arg5[%c0_2, %c0_3] : memref<128x256xf32, #tpu.memory_space<vmem>>, vector<128x256xf32>
    %5 = arith.truncf %4 : vector<128x256xf32> to vector<128x256xbf16>
    %cst = arith.constant dense<0.000000e+00> : vector<256x256xf32>
    %6 = tpu.matmul %3, %5, %cst {dimension_numbers = #tpu.dot_dimension_numbers<[1], [0], [0], [1], [0, 0, 1, 1], [], []>} : vector<256x128xbf16>, vector<128x256xbf16>, vector<256x256xf32> -> vector<256x256xf32>
    %c0_4 = arith.constant 0 : index
    %c0_5 = arith.constant 0 : index
    %7 = vector.load %arg6[%c0_4, %c0_5] : memref<1x256xf32, #tpu.memory_space<vmem>>, vector<1x256xf32>
    %8 = vector.broadcast %7 : vector<1x256xf32> to vector<256x256xf32>
    %9 = arith.addf %6, %8 : vector<256x256xf32>
    %cst_6 = arith.constant 0.000000e+00 : f32
    %10 = vector.broadcast %cst_6 : f32 to vector<256x256xf32>
    %11 = arith.maximumf %9, %10 : vector<256x256xf32>
    %c0_7 = arith.constant 0 : index
    %c0_8 = arith.constant 0 : index
    %12 = vector.load %arg7[%c0_7, %c0_8] : memref<256x256xf32, #tpu.memory_space<vmem>>, vector<256x256xf32>
    tpu.vector_store %arg7[%c0_7, %c0_8], %11 {strides = array<i32>} : memref<256x256xf32, #tpu.memory_space<vmem>>, vector<256x256xf32>,
    return
  }
  func.func @transform_0(%arg0: i32, %arg1: i32) -> (i32, i32) {
    %c0_i32 = arith.constant 0 : i32
    %c0_i32_0 = arith.constant 0 : i32
    return %arg0, %c0_i32 : i32, i32
  }
  func.func @transform_1(%arg0: i32, %arg1: i32) -> (i32, i32) {
    %c0_i32 = arith.constant 0 : i32
    %c0_i32_0 = arith.constant 0 : i32
    %c0_i32_1 = arith.constant 0 : i32
    return %c0_i32, %c0_i32_0 : i32, i32
  }
  func.func @transform_2(%arg0: i32, %arg1: i32) -> (i32, i32) {
    %c0_i32 = arith.constant 0 : i32
    %c0_i32_0 = arith.constant 0 : i32
    %c0_i32_1 = arith.constant 0 : i32
    return %c0_i32, %c0_i32_0 : i32, i32
  }
  func.func @transform_3(%arg0: i32, %arg1: i32) -> (i32, i32) {
    %c0_i32 = arith.constant 0 : i32
    %c0_i32_0 = arith.constant 0 : i32
    return %c0_i32, %arg1 : i32, i32
  }
  func.func @transform_4(%arg0: i32, %arg1: i32) -> (i32, i32) {
    %c0_i32 = arith.constant 0 : i32
    %c0_i32_0 = arith.constant 0 : i32
    return %c0_i32, %arg1 : i32, i32
  }
  func.func @transform_5(%arg0: i32, %arg1: i32) -> (i32, i32) {
    %c0_i32 = arith.constant 0 : i32
    return %arg0, %arg1 : i32, i32
  }
}

</mosaic_0001>

<bundles_post_ra>
// kernel: tpu_custom_call.1
= control target key start
LH: loop header
LB: loop body
LE: loop exit
PB: predicated region body
PF: predicated region fallthrough
CT: control target
= control target key end

     0   :  { %10 = vsyncpa [#allocation4], 0  ;;  %s1455_s0 = inlined_call_operand.hbm [shape: f32[256,256], index: 0, kind: input, shape index: {}]   ;;  %s1456_s1 = inlined_call_operand.hbm [shape: f32[256,128], index: 1, kind: input, shape index: {}]   ;;  %s1457_s2 = inlined_call_operand.vmem [shape: f32[1,128], index: 2, kind: input, shape index: {}]   ;;  %s1458_s3 = inlined_call_operand.hbm [shape: f32[128,256], index: 3, kind: input, shape index: {}]   ;;  %s1459_s4 = inlined_call_operand.vmem [shape: f32[1,256], index: 4, kind: input, shape index: {}]   ;;  %s1460_s5 = inlined_call_operand.hbm [shape: f32[256,256], index: 5, kind: output, shape index: {}]  }
   0x1   :  { %11 = vsyncpa [#allocation7], 0  ;;  %s30_s20 = sshll.u32 %s1456_s1, 4  ;;  %s31_s20 = int_to_ptr.hbm [resolvable:$true] %s30_s20 }
   0x2   :  { %12 = vsyncpa [#allocation5], 0  ;;  %s1288_s21 = smov [#allocation6]   ;;  %s17_s25 = sshll.u32 %s1455_s0, 4  ;;  %s18_s25 = int_to_ptr.hbm [resolvable:$true] %s17_s25 }
   0x3   :  { %s32_s22 = sshll.u32 %s1288_s21, 4  ;;  %s1289_s26 = smov 128   ;;  %s33_s22 = int_to_ptr.vmem [resolvable:$true] %s32_s22 }
   0x4   :  { %s1290_s27 = smov 8   ;;  %s1291_s28 = smov [#allocation3]  }
   0x5   :  { %38 = dma.hbm_to_vmem [thread:$0]  %s31_s20, 4096, %s33_s22, [#allocation7], %s1289_s26, %s1289_s26, %s1290_s27  }
   0x6   :  { %s19_s29 = sshll.u32 %s1291_s28, 4  ;;  %s1292_s30 = smov 256   ;;  %s20_s29 = int_to_ptr.vmem [resolvable:$true] %s19_s29 }
   0x7   :  { %s1293_s6 = smov 16   ;;  %s45_s8 = sshll.u32 %s1458_s3, 4  ;;  %s46_s8 = int_to_ptr.hbm [resolvable:$true] %s45_s8 }
   0x8   :  { %25 = dma.hbm_to_vmem [thread:$0]  %s18_s25, 8192, %s20_s29, [#allocation4], %s1292_s30, %s1292_s30, %s1293_s6  }
   0x9   :  { %s1294_s9 = smov [#allocation8]  }
   0xa   :  { %s47_s0 = sshll.u32 %s1294_s9, 4  ;;  %s48_s0 = int_to_ptr.vmem [resolvable:$true] %s47_s0 }
   0xb   :  { %53 = dma.hbm_to_vmem [thread:$0]  %s46_s8, 4096, %s48_s0, [#allocation7], %s1292_s30, %s1292_s30, %s1293_s6  }
   0xc   :  { %1282 = dma.done.wait [#allocation4], 8192  }
   0xd   :  { %1283 = vsyncadd [#allocation4], 4294959104 }
   0xe   :  { %1284 = dma.done.wait [#allocation7], 8192  }
   0xf   :  { %1285 = vsyncadd [#allocation7], 4294959104  ;;  %v182_v0 = vld [vmem:[#allocation6 + $0x70] sm:$0xff]  ;;  %v183_v1 = vld [vmem:[#allocation6 + $0x78] sm:$0xff]  ;;  %s988_s15 = sshll.u32 %s1460_s5, 4  ;;  %s989_s15 = int_to_ptr.hbm [resolvable:$true] %s988_s15 }
  0x10   :  { %v198_v2 = vld [vmem:[#allocation6 + $0xf0] sm:$0xff]  ;;  %v207_v3 = vpack.c.bf16 %v183_v1, %v182_v0  ;;  %v199_v4 = vld [vmem:[#allocation6 + $0xf8] sm:$0xff]  ;;  %v180_v5 = vld [vmem:[#allocation6 + $0x60] sm:$0xff] }
  0x11   :  { %v181_v6 = vld [vmem:[#allocation6 + $0x68] sm:$0xff]  ;;  %v215_v7 = vpack.c.bf16 %v199_v4, %v198_v2  ;;  %v196_v8 = vld [vmem:[#allocation6 + $0xe0] sm:$0xff]  ;;  %v178_v12 = vld [vmem:[#allocation6 + $0x50] sm:$0xff] }
  0x12   :  { %v197_v9 = vld [vmem:[#allocation6 + $0xe8] sm:$0xff]  ;;  %220 = vmatpush.bf16.msra.mxu0 %v207_v3  ;;  %v206_v10 = vpack.c.bf16 %v181_v6, %v180_v5  ;;  %v179_v13 = vld [vmem:[#allocation6 + $0x58] sm:$0xff]  ;;  %v194_v14 = vld [vmem:[#allocation6 + $0xd0] sm:$0xff] }
  0x13   :  { %309 = vmatpush.bf16.msra.mxu1 %v215_v7  ;;  %v214_v11 = vpack.c.bf16 %v197_v9, %v196_v8  ;;  %v195_v15 = vld [vmem:[#allocation6 + $0xd8] sm:$0xff]  ;;  %v205_v16 = vpack.c.bf16 %v179_v13, %v178_v12  ;;  %v176_v18 = vld [vmem:[#allocation6 + $0x40] sm:$0xff]  ;;  %v177_v19 = vld [vmem:[#allocation6 + $0x48] sm:$0xff] }
  0x14   :  { %v213_v17 = vpack.c.bf16 %v195_v15, %v194_v14  ;;  %v192_v20 = vld [vmem:[#allocation6 + $0xc0] sm:$0xff]  ;;  %v193_v21 = vld [vmem:[#allocation6 + $0xc8] sm:$0xff]  ;;  %v204_v22 = vpack.c.bf16 %v177_v19, %v176_v18  ;;  %v174_v24 = vld [vmem:[#allocation6 + $0x30] sm:$0xff] }
  0x15   :  { %v212_v23 = vpack.c.bf16 %v193_v21, %v192_v20  ;;  %v175_v25 = vld [vmem:[#allocation6 + $0x38] sm:$0xff]  ;;  %v190_v26 = vld [vmem:[#allocation6 + $0xb0] sm:$0xff]  ;;  %v172_v30 = vld [vmem:[#allocation6 + $0x20] sm:$0xff] }
  0x16   :  { %221 = vmatpush.bf16.msra.mxu0 %v206_v10  ;;  %v191_v27 = vld [vmem:[#allocation6 + $0xb8] sm:$0xff]  ;;  %v203_v28 = vpack.c.bf16 %v175_v25, %v174_v24  ;;  %v173_v31 = vld [vmem:[#allocation6 + $0x28] sm:$0xff]  ;;  %v188_v32 = vld [vmem:[#allocation6 + $0xa0] sm:$0xff] }
  0x17   :  { %310 = vmatpush.bf16.msra.mxu1 %v214_v11  ;;  %v211_v29 = vpack.c.bf16 %v191_v27, %v190_v26  ;;  %v189_v33 = vld [vmem:[#allocation6 + $0xa8] sm:$0xff]  ;;  %v202_v34 = vpack.c.bf16 %v173_v31, %v172_v30  ;;  %v170_v36 = vld [vmem:[#allocation6 + $0x10] sm:$0xff]  ;;  %v171_v37 = vld [vmem:[#allocation6 + $0x18] sm:$0xff] }
  0x18   :  { %v210_v35 = vpack.c.bf16 %v189_v33, %v188_v32  ;;  %v186_v38 = vld [vmem:[#allocation6 + $0x90] sm:$0xff]  ;;  %v187_v39 = vld [vmem:[#allocation6 + $0x98] sm:$0xff]  ;;  %v201_v40 = vpack.c.bf16 %v171_v37, %v170_v36  ;;  %v168_v42 = vld [vmem:[#allocation6] sm:$0xff] }
  0x19   :  { %v209_v41 = vpack.c.bf16 %v187_v39, %v186_v38  ;;  %v169_v43 = vld [vmem:[#allocation6 + $0x8] sm:$0xff]  ;;  %v184_v44 = vld [vmem:[#allocation6 + $0x80] sm:$0xff]  ;;  %v74_v48 = vld [vmem:[#allocation3 + $0x10] sm:$0xff] }
  0x1a   :  { %222 = vmatpush.bf16.msra.mxu0 %v205_v16  ;;  %v185_v45 = vld [vmem:[#allocation6 + $0x88] sm:$0xff]  ;;  %v200_v46 = vpack.c.bf16 %v169_v43, %v168_v42  ;;  %v72_v47 = vld [vmem:[#allocation3] sm:$0xff]  ;;  %v75_v51 = vld [vmem:[#allocation3 + $0x18] sm:$0xff] }
  0x1b   :  { %311 = vmatpush.bf16.msra.mxu1 %v213_v17  ;;  %v208_v49 = vpack.c.bf16 %v185_v45, %v184_v44  ;;  %v73_v50 = vld [vmem:[#allocation3 + $0x8] sm:$0xff]  ;;  %v136_v52 = vpack.c.bf16 %v74_v48, %v72_v47  ;;  %v76_v54 = vld [vmem:[#allocation3 + $0x20] sm:$0xff]  ;;  %v78_v55 = vld [vmem:[#allocation3 + $0x30] sm:$0xff] }
  0x1c   :  { %v137_v53 = vpack.c.bf16 %v75_v51, %v73_v50  ;;  %v77_v56 = vld [vmem:[#allocation3 + $0x28] sm:$0xff]  ;;  %v79_v57 = vld [vmem:[#allocation3 + $0x38] sm:$0xff]  ;;  %v138_v58 = vpack.c.bf16 %v78_v55, %v76_v54  ;;  %v80_v60 = vld [vmem:[#allocation3 + $0x40] sm:$0xff] }
  0x1d   :  { %v139_v59 = vpack.c.bf16 %v79_v57, %v77_v56  ;;  %v82_v61 = vld [vmem:[#allocation3 + $0x50] sm:$0xff]  ;;  %v81_v62 = vld [vmem:[#allocation3 + $0x48] sm:$0xff]  ;;  %v83_v63 = vld [vmem:[#allocation3 + $0x58] sm:$0xff] }
  0x1e   :  { %223 = vmatpush.bf16.msra.mxu0 %v204_v22  ;;  %v140_v0 = vpack.c.bf16 %v82_v61, %v80_v60  ;;  %v141_v1 = vpack.c.bf16 %v83_v63, %v81_v62  ;;  %v84_v2 = vld [vmem:[#allocation3 + $0x60] sm:$0xff]  ;;  %v86_v3 = vld [vmem:[#allocation3 + $0x70] sm:$0xff]  ;;  %v85_v4 = vld [vmem:[#allocation3 + $0x68] sm:$0xff] }
  0x1f   :  { %312 = vmatpush.bf16.msra.mxu1 %v212_v23  ;;  %v87_v5 = vld [vmem:[#allocation3 + $0x78] sm:$0xff]  ;;  %v142_v6 = vpack.c.bf16 %v86_v3, %v84_v2  ;;  %v88_v8 = vld [vmem:[#allocation3 + $0x80] sm:$0xff]  ;;  %v90_v9 = vld [vmem:[#allocation3 + $0x90] sm:$0xff] }
  0x20   :  { %v143_v7 = vpack.c.bf16 %v87_v5, %v85_v4  ;;  %v89_v10 = vld [vmem:[#allocation3 + $0x88] sm:$0xff]  ;;  %v91_v11 = vld [vmem:[#allocation3 + $0x98] sm:$0xff]  ;;  %v144_v12 = vpack.c.bf16 %v90_v9, %v88_v8  ;;  %v92_v14 = vld [vmem:[#allocation3 + $0xa0] sm:$0xff] }
  0x21   :  { %v145_v13 = vpack.c.bf16 %v91_v11, %v89_v10  ;;  %v94_v15 = vld [vmem:[#allocation3 + $0xb0] sm:$0xff]  ;;  %v93_v16 = vld [vmem:[#allocation3 + $0xa8] sm:$0xff]  ;;  %v95_v17 = vld [vmem:[#allocation3 + $0xb8] sm:$0xff] }
  0x22   :  { %224 = vmatpush.bf16.msra.mxu0 %v203_v28  ;;  %v146_v18 = vpack.c.bf16 %v94_v15, %v92_v14  ;;  %v147_v19 = vpack.c.bf16 %v95_v17, %v93_v16  ;;  %v554_v20 = vld [vmem:[#allocation8 + $0xe0] sm:$0xff]  ;;  %v556_v21 = vld [vmem:[#allocation8 + $0xf0] sm:$0xff]  ;;  %v555_v22 = vld [vmem:[#allocation8 + $0xe8] sm:$0xff] }
  0x23   :  { %313 = vmatpush.bf16.msra.mxu1 %v211_v29  ;;  %v572_v23 = vpack.c.bf16 %v556_v21, %v554_v20  ;;  %v557_v24 = vld [vmem:[#allocation8 + $0xf8] sm:$0xff]  ;;  %v96_v26 = vld [vmem:[#allocation3 + $0xc0] sm:$0xff]  ;;  %v98_v27 = vld [vmem:[#allocation3 + $0xd0] sm:$0xff] }
  0x24   :  { %v573_v25 = vpack.c.bf16 %v557_v24, %v555_v22  ;;  %v97_v28 = vld [vmem:[#allocation3 + $0xc8] sm:$0xff]  ;;  %v99_v29 = vld [vmem:[#allocation3 + $0xd8] sm:$0xff]  ;;  %v550_v30 = vld [vmem:[#allocation8 + $0xc0] sm:$0xff] }
  0x25   :  { %676 = vmatpush.bf16.msra.mxu2 %v572_v23  ;;  %v552_v31 = vld [vmem:[#allocation8 + $0xd0] sm:$0xff]  ;;  %v551_v32 = vld [vmem:[#allocation8 + $0xc8] sm:$0xff]  ;;  %v149_v37 = vpack.c.bf16 %v99_v29, %v97_v28  ;;  %v546_v38 = vld [vmem:[#allocation8 + $0xa0] sm:$0xff] }
  0x26   :  { %225 = vmatpush.bf16.msra.mxu0 %v202_v34  ;;  %765 = vmatpush.bf16.msra.mxu3 %v573_v25  ;;  %v570_v33 = vpack.c.bf16 %v552_v31, %v550_v30  ;;  %v553_v34 = vld [vmem:[#allocation8 + $0xd8] sm:$0xff]  ;;  %v548_v39 = vld [vmem:[#allocation8 + $0xb0] sm:$0xff]  ;;  %v542_v44 = vld [vmem:[#allocation8 + $0x80] sm:$0xff] }
  0x27   :  { %314 = vmatpush.bf16.msra.mxu1 %v210_v35  ;;  %v148_v35 = vpack.c.bf16 %v98_v27, %v96_v26  ;;  %v571_v36 = vpack.c.bf16 %v553_v34, %v551_v32  ;;  %v549_v42 = vld [vmem:[#allocation8 + $0xb8] sm:$0xff]  ;;  %v544_v45 = vld [vmem:[#allocation8 + $0x90] sm:$0xff]  ;;  %v538_v50 = vld [vmem:[#allocation8 + $0x60] sm:$0xff] }
  0x28   :  { %v566_v47 = vpack.c.bf16 %v544_v45, %v542_v44  ;;  %v545_v48 = vld [vmem:[#allocation8 + $0x98] sm:$0xff]  ;;  %v540_v51 = vld [vmem:[#allocation8 + $0x70] sm:$0xff]  ;;  %v100_v55 = vld [vmem:[#allocation3 + $0xe0] sm:$0xff] }
  0x29   :  { %677 = vmatpush.bf16.msra.mxu2 %v570_v33  ;;  %v541_v54 = vld [vmem:[#allocation8 + $0x78] sm:$0xff]  ;;  %v102_v57 = vld [vmem:[#allocation3 + $0xf0] sm:$0xff]  ;;  %v534_v60 = vld [vmem:[#allocation8 + $0x40] sm:$0xff] }
  0x2a   :  { %226 = vmatpush.bf16.msra.mxu0 %v201_v40  ;;  %766 = vmatpush.bf16.msra.mxu3 %v571_v36  ;;  %v568_v40 = vpack.c.bf16 %v548_v39, %v546_v38  ;;  %v536_v61 = vld [vmem:[#allocation8 + $0x50] sm:$0xff]  ;;  %v535_v62 = vld [vmem:[#allocation8 + $0x48] sm:$0xff]  ;;  %v530_v4 = vld [vmem:[#allocation8 + $0x20] sm:$0xff] }
  0x2b   :  { %315 = vmatpush.bf16.msra.mxu1 %v209_v41  ;;  %v547_v41 = vld [vmem:[#allocation8 + $0xa8] sm:$0xff]  ;;  %v562_v63 = vpack.c.bf16 %v536_v61, %v534_v60  ;;  %v532_v5 = vld [vmem:[#allocation8 + $0x30] sm:$0xff]  ;;  %v533_v8 = vld [vmem:[#allocation8 + $0x38] sm:$0xff] }
  0x2c   :  { %v569_v43 = vpack.c.bf16 %v549_v42, %v547_v41  ;;  %v526_v10 = vld [vmem:[#allocation8] sm:$0xff]  ;;  %v528_v11 = vld [vmem:[#allocation8 + $0x10] sm:$0xff]  ;;  %v529_v14 = vld [vmem:[#allocation8 + $0x18] sm:$0xff] }
  0x2d   :  { %678 = vmatpush.bf16.msra.mxu2 %v568_v40  ;;  %v104_v16 = vld [vmem:[#allocation3 + $0x100] sm:$0xff]  ;;  %v106_v17 = vld [vmem:[#allocation3 + $0x110] sm:$0xff]  ;;  %v111_v36 = vld [vmem:[#allocation3 + $0x138] sm:$0xff] }
  0x2e   :  { %227 = vmatpush.bf16.msra.mxu0 %v200_v46  ;;  %v543_v46 = vld [vmem:[#allocation8 + $0x88] sm:$0xff]  ;;  %767 = vmatpush.bf16.msra.mxu3 %v569_v43  ;;  %v152_v20 = vpack.c.bf16 %v106_v17, %v104_v16  ;;  %v1344_v23 = vld [vmem:[%s1457_s2] ss:$0 sm:$0xff]  ;;  %v110_v32 = vld [vmem:[#allocation3 + $0x130] sm:$0xff] }
  0x2f   :  { %316 = vmatpush.bf16.msra.mxu1 %v208_v49  ;;  %v567_v49 = vpack.c.bf16 %v545_v48, %v543_v46  ;;  %v108_v31 = vld [vmem:[#allocation3 + $0x120] sm:$0xff] }
  0x30   :  { %v154_v38 = vpack.c.bf16 %v110_v32, %v108_v31 }
  0x31   :  { %228 = vmatmul.bf16.vlgmr.msra.gmra.mxu0 %v136_v52  ;;  %679 = vmatpush.bf16.msra.mxu2 %v566_v47  ;;  %v539_v52 = vld [vmem:[#allocation8 + $0x68] sm:$0xff] }
  0x32   :  { %317 = vmatmul.bf16.vlgmr.msra.gmra.mxu1 %v137_v53  ;;  %768 = vmatpush.bf16.msra.mxu3 %v567_v49  ;;  %v564_v53 = vpack.c.bf16 %v540_v51, %v538_v50  ;;  %v565_v56 = vpack.c.bf16 %v541_v54, %v539_v52  ;;  %v112_v49 = vld [vmem:[#allocation3 + $0x140] sm:$0xff]  ;;  %v114_v50 = vld [vmem:[#allocation3 + $0x150] sm:$0xff]  ;;  %v115_v54 = vld [vmem:[#allocation3 + $0x158] sm:$0xff] }
  0x35   :  { %680 = vmatpush.bf16.msra.mxu2 %v564_v53  ;;  %v113_v53 = vld [vmem:[#allocation3 + $0x148] sm:$0xff] }
  0x36   :  { %769 = vmatpush.bf16.msra.mxu3 %v565_v56  ;;  %v156_v56 = vpack.c.bf16 %v114_v50, %v112_v49 }
  0x39   :  { %681 = vmatpush.bf16.msra.mxu2 %v562_v63 }
  0x41   :  { %233 = vmatmul.bf16.gmra.mxu0 %v138_v58  ;;  %v101_v58 = vld [vmem:[#allocation3 + $0xe8] sm:$0xff] }
  0x42   :  { %322 = vmatmul.bf16.gmra.mxu1 %v139_v59  ;;  %v103_v59 = vld [vmem:[#allocation3 + $0xf8] sm:$0xff] }
  0x43   :  { %v151_v3 = vpack.c.bf16 %v103_v59, %v101_v58  ;;  %v157_v58 = vpack.c.bf16 %v115_v54, %v113_v53 }
  0x51   :  { %238 = vmatmul.bf16.gmra.mxu0 %v140_v0  ;;  %v537_v0 = vld [vmem:[#allocation8 + $0x58] sm:$0xff] }
  0x52   :  { %327 = vmatmul.bf16.gmra.mxu1 %v141_v1  ;;  %v150_v1 = vpack.c.bf16 %v102_v57, %v100_v55  ;;  %v563_v2 = vpack.c.bf16 %v537_v0, %v535_v62 }
  0x54   :  { %770 = vmatpush.bf16.msra.mxu3 %v563_v2 }
  0x61   :  { %243 = vmatmul.bf16.gmra.mxu0 %v142_v6  ;;  %v560_v6 = vpack.c.bf16 %v532_v5, %v530_v4  ;;  %v118_v4 = vld [vmem:[#allocation3 + $0x170] sm:$0xff] }
  0x62   :  { %332 = vmatmul.bf16.gmra.mxu1 %v143_v7  ;;  %v531_v7 = vld [vmem:[#allocation8 + $0x28] sm:$0xff] }
  0x63   :  { %v561_v9 = vpack.c.bf16 %v533_v8, %v531_v7  ;;  %682 = vmatpush.bf16.msra.mxu2 %v560_v6  ;;  %v117_v7 = vld [vmem:[#allocation3 + $0x168] sm:$0xff]  ;;  %v119_v8 = vld [vmem:[#allocation3 + $0x178] sm:$0xff] }
  0x65   :  { %771 = vmatpush.bf16.msra.mxu3 %v561_v9 }
  0x71   :  { %248 = vmatmul.bf16.gmra.mxu0 %v144_v12  ;;  %v527_v12 = vld [vmem:[#allocation8 + $0x8] sm:$0xff] }
  0x72   :  { %337 = vmatmul.bf16.gmra.mxu1 %v145_v13  ;;  %v558_v13 = vpack.c.bf16 %v528_v11, %v526_v10  ;;  %v559_v15 = vpack.c.bf16 %v529_v14, %v527_v12  ;;  %v159_v12 = vpack.c.bf16 %v119_v8, %v117_v7 }
  0x74   :  { %683 = vmatpush.bf16.msra.mxu2 %v558_v13  ;;  %772 = vmatpush.bf16.msra.mxu3 %v559_v15 }
  0x81   :  { %253 = vmatmul.bf16.gmra.mxu0 %v146_v18  ;;  %v105_v18 = vld [vmem:[#allocation3 + $0x108] sm:$0xff] }
  0x82   :  { %342 = vmatmul.bf16.gmra.mxu1 %v147_v19  ;;  %v107_v19 = vld [vmem:[#allocation3 + $0x118] sm:$0xff] }
  0x83   :  { %v153_v22 = vpack.c.bf16 %v107_v19, %v105_v18 }
  0x91   :  { %258 = vmatmul.bf16.gmra.mxu0 %v148_v35  ;;  %v109_v35 = vld [vmem:[#allocation3 + $0x128] sm:$0xff] }
  0x92   :  { %347 = vmatmul.bf16.gmra.mxu1 %v149_v37  ;;  %v155_v40 = vpack.c.bf16 %v111_v36, %v109_v35 }
  0xa1   :  { %263 = vmatmul.bf16.gmra.mxu0 %v150_v1 }
  0xa2   :  { %352 = vmatmul.bf16.gmra.mxu1 %v151_v3  ;;  %v116_v3 = vld [vmem:[#allocation3 + $0x160] sm:$0xff] }
  0xa3   :  { %v158_v10 = vpack.c.bf16 %v118_v4, %v116_v3 }
  0xae   :  { %v229_v21 = vpop.f32.mrf.mxu0 }
  0xaf   :  { %v318_v24 = vpop.f32.mrf.mxu1  ;;  %v230_v25 = vadd.f32 %v1344_v23, %v229_v21  ;;  %v120_v21 = vld [vmem:[#allocation3 + $0x180] sm:$0xff] }
  0xb1   :  { %268 = vmatmul.bf16.gmra.mxu0 %v152_v20  ;;  %v319_v27 = vadd.f32 %v318_v24, %v230_v25 }
  0xb2   :  { %357 = vmatmul.bf16.gmra.mxu1 %v153_v22  ;;  %v122_v22 = vld [vmem:[#allocation3 + $0x190] sm:$0xff] }
  0xb3   :  { %v398_v33 = vmax.f32 %v319_v27, 0.0  ;;  %v123_v27 = vld [vmem:[#allocation3 + $0x198] sm:$0xff] }
  0xb6   :  { %v231_v26 = vpop.f32.mrf.mxu0 }
  0xb7   :  { %v232_v28 = vadd.f32 %v1344_v23, %v231_v26  ;;  %v320_v29 = vpop.f32.mrf.mxu1  ;;  %v121_v26 = vld [vmem:[#allocation3 + $0x188] sm:$0xff] }
  0xb8   :  { %v161_v31 = vpack.c.bf16 %v123_v27, %v121_v26 }
  0xb9   :  { %v321_v30 = vadd.f32 %v320_v29, %v232_v28  ;;  %v160_v29 = vpack.c.bf16 %v122_v22, %v120_v21 }
  0xbb   :  { %v399_v34 = vmax.f32 %v321_v30, 0.0 }
  0xbd   :  { %v1085_v37 = vpack.c.bf16 %v399_v34, %v398_v33 }
  0xbe   :  { %v234_v39 = vpop.f32.mrf.mxu0 }
  0xbf   :  { %1086 = vst [vmem:[#allocation2 + $0x30] sm:$0xff] %v1085_v37   ;;  %v323_v41 = vpop.f32.mrf.mxu1  ;;  %v235_v42 = vadd.f32 %v1344_v23, %v234_v39 }
  0xc1   :  { %273 = vmatmul.bf16.gmra.mxu0 %v154_v38  ;;  %v324_v45 = vadd.f32 %v323_v41, %v235_v42  ;;  %v126_v41 = vld [vmem:[#allocation3 + $0x1b0] sm:$0xff] }
  0xc2   :  { %362 = vmatmul.bf16.gmra.mxu1 %v155_v40  ;;  %v124_v40 = vld [vmem:[#allocation3 + $0x1a0] sm:$0xff] }
  0xc3   :  { %v400_v51 = vmax.f32 %v324_v45, 0.0  ;;  %v127_v45 = vld [vmem:[#allocation3 + $0x1b8] sm:$0xff] }
  0xc6   :  { %v236_v43 = vpop.f32.mrf.mxu0  ;;  %v1066_v44 = vld [vmem:[#allocation2 + $0x30] sm:$0xff] }
  0xc7   :  { %v237_v46 = vadd.f32 %v1344_v23, %v236_v43  ;;  %v325_v47 = vpop.f32.mrf.mxu1  ;;  %684 = vmatmul.bf16.vlgmr.msra.gmra.mxu2 %v1066_v44  ;;  %773 = vmatmul.bf16.vlgmr.msra.gmra.mxu3 %v1066_v44  ;;  %v125_v44 = vld [vmem:[#allocation3 + $0x1a8] sm:$0xff] }
  0xc8   :  { %v163_v49 = vpack.c.bf16 %v127_v45, %v125_v44 }
  0xc9   :  { %v326_v48 = vadd.f32 %v325_v47, %v237_v46  ;;  %v162_v47 = vpack.c.bf16 %v126_v41, %v124_v40 }
  0xcb   :  { %v401_v52 = vmax.f32 %v326_v48, 0.0 }
  0xcd   :  { %v1090_v55 = vpack.c.bf16 %v401_v52, %v400_v51 }
  0xce   :  { %v239_v57 = vpop.f32.mrf.mxu0 }
  0xcf   :  { %1162 = vst [vmem:[#allocation2] sm:$0xff] %v1090_v55   ;;  %v328_v59 = vpop.f32.mrf.mxu1  ;;  %v240_v60 = vadd.f32 %v1344_v23, %v239_v57 }
  0xd1   :  { %278 = vmatmul.bf16.gmra.mxu0 %v156_v56  ;;  %v329_v63 = vadd.f32 %v328_v59, %v240_v60  ;;  %v130_v59 = vld [vmem:[#allocation3 + $0x1d0] sm:$0xff] }
  0xd2   :  { %367 = vmatmul.bf16.gmra.mxu1 %v157_v58  ;;  %v128_v58 = vld [vmem:[#allocation3 + $0x1c0] sm:$0xff] }
  0xd3   :  { %v402_v5 = vmax.f32 %v329_v63, 0.0  ;;  %v131_v63 = vld [vmem:[#allocation3 + $0x1d8] sm:$0xff] }
  0xd6   :  { %v241_v61 = vpop.f32.mrf.mxu0  ;;  %v1067_v62 = vld [vmem:[#allocation2] sm:$0xff] }
  0xd7   :  { %v242_v0 = vadd.f32 %v1344_v23, %v241_v61  ;;  %v330_v1 = vpop.f32.mrf.mxu1  ;;  %689 = vmatmul.bf16.gmra.mxu2 %v1067_v62  ;;  %778 = vmatmul.bf16.gmra.mxu3 %v1067_v62  ;;  %v129_v62 = vld [vmem:[#allocation3 + $0x1c8] sm:$0xff] }
  0xd8   :  { %v165_v3 = vpack.c.bf16 %v131_v63, %v129_v62 }
  0xd9   :  { %v331_v2 = vadd.f32 %v330_v1, %v242_v0  ;;  %v164_v1 = vpack.c.bf16 %v130_v59, %v128_v58 }
  0xdb   :  { %v403_v6 = vmax.f32 %v331_v2, 0.0 }
  0xdd   :  { %v1095_v9 = vpack.c.bf16 %v403_v6, %v402_v5 }
  0xde   :  { %v244_v11 = vpop.f32.mrf.mxu0 }
  0xdf   :  { %1163 = vst [vmem:[#allocation2 + $0x58] sm:$0xff] %v1095_v9   ;;  %v333_v13 = vpop.f32.mrf.mxu1  ;;  %v245_v14 = vadd.f32 %v1344_v23, %v244_v11 }
  0xe1   :  { %283 = vmatmul.bf16.gmra.mxu0 %v158_v10  ;;  %v334_v17 = vadd.f32 %v333_v13, %v245_v14  ;;  %v134_v13 = vld [vmem:[#allocation3 + $0x1f0] sm:$0xff] }
  0xe2   :  { %372 = vmatmul.bf16.gmra.mxu1 %v159_v12  ;;  %v132_v12 = vld [vmem:[#allocation3 + $0x1e0] sm:$0xff] }
  0xe3   :  { %v404_v24 = vmax.f32 %v334_v17, 0.0  ;;  %v135_v17 = vld [vmem:[#allocation3 + $0x1f8] sm:$0xff] }
  0xe6   :  { %v246_v15 = vpop.f32.mrf.mxu0  ;;  %v1068_v16 = vld [vmem:[#allocation2 + $0x58] sm:$0xff] }
  0xe7   :  { %v247_v18 = vadd.f32 %v1344_v23, %v246_v15  ;;  %v335_v19 = vpop.f32.mrf.mxu1  ;;  %694 = vmatmul.bf16.gmra.mxu2 %v1068_v16  ;;  %783 = vmatmul.bf16.gmra.mxu3 %v1068_v16  ;;  %v133_v16 = vld [vmem:[#allocation3 + $0x1e8] sm:$0xff] }
  0xe8   :  { %v167_v21 = vpack.c.bf16 %v135_v17, %v133_v16 }
  0xe9   :  { %v336_v20 = vadd.f32 %v335_v19, %v247_v18  ;;  %v166_v19 = vpack.c.bf16 %v134_v13, %v132_v12 }
  0xeb   :  { %v405_v25 = vmax.f32 %v336_v20, 0.0 }
  0xed   :  { %v1100_v28 = vpack.c.bf16 %v405_v25, %v404_v24 }
  0xee   :  { %v249_v30 = vpop.f32.mrf.mxu0 }
  0xef   :  { %1164 = vst [vmem:[#allocation2 + $0x18] sm:$0xff] %v1100_v28   ;;  %v338_v32 = vpop.f32.mrf.mxu1  ;;  %v250_v33 = vadd.f32 %v1344_v23, %v249_v30 }
  0xf1   :  { %288 = vmatmul.bf16.gmra.mxu0 %v160_v29  ;;  %v339_v36 = vadd.f32 %v338_v32, %v250_v33 }
  0xf2   :  { %377 = vmatmul.bf16.gmra.mxu1 %v161_v31 }
  0xf3   :  { %v406_v42 = vmax.f32 %v339_v36, 0.0 }
  0xf6   :  { %v251_v34 = vpop.f32.mrf.mxu0  ;;  %v1069_v35 = vld [vmem:[#allocation2 + $0x18] sm:$0xff] }
  0xf7   :  { %v252_v37 = vadd.f32 %v1344_v23, %v251_v34  ;;  %v340_v38 = vpop.f32.mrf.mxu1  ;;  %699 = vmatmul.bf16.gmra.mxu2 %v1069_v35  ;;  %788 = vmatmul.bf16.gmra.mxu3 %v1069_v35 }
  0xf9   :  { %v341_v39 = vadd.f32 %v340_v38, %v252_v37 }
  0xfb   :  { %v407_v43 = vmax.f32 %v341_v39, 0.0 }
  0xfd   :  { %v1105_v46 = vpack.c.bf16 %v407_v43, %v406_v42 }
  0xfe   :  { %v254_v48 = vpop.f32.mrf.mxu0 }
  0xff   :  { %1165 = vst [vmem:[#allocation2 + $0x50] sm:$0xff] %v1105_v46   ;;  %v343_v50 = vpop.f32.mrf.mxu1  ;;  %v255_v51 = vadd.f32 %v1344_v23, %v254_v48 }
 0x101   :  { %293 = vmatmul.bf16.gmra.mxu0 %v162_v47  ;;  %v344_v54 = vadd.f32 %v343_v50, %v255_v51 }
 0x102   :  { %382 = vmatmul.bf16.gmra.mxu1 %v163_v49  ;;  %v574_v49 = vld [vmem:[%s1459_s4] sm:$0x3]  ;;  %s1295_s4 = smov [#allocation9]  }
 0x103   :  { %v408_v60 = vmax.f32 %v344_v54, 0.0  ;;  %s986_s12 = sshll.u32 %s1295_s4, 4  ;;  %s987_s12 = int_to_ptr.vmem [resolvable:$true] %s986_s12 }
 0x106   :  { %v256_v52 = vpop.f32.mrf.mxu0  ;;  %v1070_v53 = vld [vmem:[#allocation2 + $0x50] sm:$0xff] }
 0x107   :  { %v257_v55 = vadd.f32 %v1344_v23, %v256_v52  ;;  %v345_v56 = vpop.f32.mrf.mxu1  ;;  %704 = vmatmul.bf16.gmra.mxu2 %v1070_v53  ;;  %793 = vmatmul.bf16.gmra.mxu3 %v1070_v53 }
 0x109   :  { %v346_v57 = vadd.f32 %v345_v56, %v257_v55  ;;  %v1369_v55 = vperm.slane %v574_v49, 0  ;;  %v1371_v56 = vperm.slane %v574_v49, 1 }
 0x10b   :  { %v409_v61 = vmax.f32 %v346_v57, 0.0 }
 0x10d   :  { %v1110_v0 = vpack.c.bf16 %v409_v61, %v408_v60 }
 0x10e   :  { %v259_v2 = vpop.f32.mrf.mxu0 }
 0x10f   :  { %1166 = vst [vmem:[#allocation2 + $0x68] sm:$0xff] %v1110_v0   ;;  %v348_v4 = vpop.f32.mrf.mxu1  ;;  %v260_v5 = vadd.f32 %v1344_v23, %v259_v2 }
 0x111   :  { %298 = vmatmul.bf16.gmra.mxu0 %v164_v1  ;;  %v349_v8 = vadd.f32 %v348_v4, %v260_v5 }
 0x112   :  { %387 = vmatmul.bf16.gmra.mxu1 %v165_v3 }
 0x113   :  { %v410_v14 = vmax.f32 %v349_v8, 0.0 }
 0x116   :  { %v261_v6 = vpop.f32.mrf.mxu0  ;;  %v1071_v7 = vld [vmem:[#allocation2 + $0x68] sm:$0xff] }
 0x117   :  { %v262_v9 = vadd.f32 %v1344_v23, %v261_v6  ;;  %v350_v10 = vpop.f32.mrf.mxu1  ;;  %709 = vmatmul.bf16.gmra.mxu2 %v1071_v7  ;;  %798 = vmatmul.bf16.gmra.mxu3 %v1071_v7 }
 0x119   :  { %v351_v11 = vadd.f32 %v350_v10, %v262_v9 }
 0x11b   :  { %v411_v15 = vmax.f32 %v351_v11, 0.0 }
 0x11d   :  { %v1115_v18 = vpack.c.bf16 %v411_v15, %v410_v14 }
 0x11e   :  { %v264_v20 = vpop.f32.mrf.mxu0 }
 0x11f   :  { %1167 = vst [vmem:[#allocation2 + $0x8] sm:$0xff] %v1115_v18   ;;  %v353_v22 = vpop.f32.mrf.mxu1  ;;  %v265_v24 = vadd.f32 %v1344_v23, %v264_v20 }
 0x121   :  { %303 = vmatmul.bf16.gmra.mxu0 %v166_v19  ;;  %v354_v27 = vadd.f32 %v353_v22, %v265_v24 }
 0x122   :  { %392 = vmatmul.bf16.gmra.mxu1 %v167_v21 }
 0x123   :  { %v412_v31 = vmax.f32 %v354_v27, 0.0 }
 0x126   :  { %v266_v25 = vpop.f32.mrf.mxu0  ;;  %v1072_v26 = vld [vmem:[#allocation2 + $0x8] sm:$0xff] }
 0x127   :  { %v267_v28 = vadd.f32 %v1344_v23, %v266_v25  ;;  %v355_v29 = vpop.f32.mrf.mxu1  ;;  %714 = vmatmul.bf16.gmra.mxu2 %v1072_v26  ;;  %803 = vmatmul.bf16.gmra.mxu3 %v1072_v26 }
 0x129   :  { %v356_v30 = vadd.f32 %v355_v29, %v267_v28 }
 0x12b   :  { %v413_v32 = vmax.f32 %v356_v30, 0.0 }
 0x12d   :  { %v1120_v33 = vpack.c.bf16 %v413_v32, %v412_v31 }
 0x12e   :  { %v269_v34 = vpop.f32.mrf.mxu0 }
 0x12f   :  { %1168 = vst [vmem:[#allocation2 + $0x48] sm:$0xff] %v1120_v33   ;;  %v358_v35 = vpop.f32.mrf.mxu1  ;;  %v270_v36 = vadd.f32 %v1344_v23, %v269_v34 }
 0x131   :  { %v359_v39 = vadd.f32 %v358_v35, %v270_v36 }
 0x133   :  { %v414_v43 = vmax.f32 %v359_v39, 0.0 }
 0x136   :  { %v271_v37 = vpop.f32.mrf.mxu0  ;;  %v1073_v38 = vld [vmem:[#allocation2 + $0x48] sm:$0xff] }
 0x137   :  { %v272_v40 = vadd.f32 %v1344_v23, %v271_v37  ;;  %v360_v41 = vpop.f32.mrf.mxu1  ;;  %719 = vmatmul.bf16.gmra.mxu2 %v1073_v38  ;;  %808 = vmatmul.bf16.gmra.mxu3 %v1073_v38 }
 0x139   :  { %v361_v42 = vadd.f32 %v360_v41, %v272_v40 }
 0x13b   :  { %v415_v44 = vmax.f32 %v361_v42, 0.0 }
 0x13d   :  { %v1125_v45 = vpack.c.bf16 %v415_v44, %v414_v43 }
 0x13e   :  { %v274_v46 = vpop.f32.mrf.mxu0 }
 0x13f   :  { %1169 = vst [vmem:[#allocation2 + $0x40] sm:$0xff] %v1125_v45   ;;  %v363_v47 = vpop.f32.mrf.mxu1  ;;  %v275_v48 = vadd.f32 %v1344_v23, %v274_v46 }
 0x141   :  { %v364_v52 = vadd.f32 %v363_v47, %v275_v48 }
 0x143   :  { %v416_v58 = vmax.f32 %v364_v52, 0.0 }
 0x146   :  { %v276_v50 = vpop.f32.mrf.mxu0  ;;  %v1074_v51 = vld [vmem:[#allocation2 + $0x40] sm:$0xff] }
 0x147   :  { %v277_v53 = vadd.f32 %v1344_v23, %v276_v50  ;;  %v365_v54 = vpop.f32.mrf.mxu1  ;;  %724 = vmatmul.bf16.gmra.mxu2 %v1074_v51  ;;  %813 = vmatmul.bf16.gmra.mxu3 %v1074_v51 }
 0x149   :  { %v366_v57 = vadd.f32 %v365_v54, %v277_v53 }
 0x14a   :  { %v685_v60 = vpop.f32.mrf.mxu2  ;;  %v774_v61 = vpop.f32.mrf.mxu3 }
 0x14b   :  { %v417_v59 = vmax.f32 %v366_v57, 0.0  ;;  %v686_v62 = vadd.f32 %v685_v60, %v1369_v55  ;;  %v775_v63 = vadd.f32 %v774_v61, %v1371_v56 }
 0x14d   :  { %v1130_v0 = vpack.c.bf16 %v417_v59, %v416_v58  ;;  %v854_v1 = vmax.f32 %v686_v62, 0.0  ;;  %v855_v2 = vmax.f32 %v775_v63, 0.0 }
 0x14e   :  { %v279_v3 = vpop.f32.mrf.mxu0 }
 0x14f   :  { %1170 = vst [vmem:[#allocation2 + $0x20] sm:$0xff] %v1130_v0   ;;  %v368_v4 = vpop.f32.mrf.mxu1  ;;  %v280_v5 = vadd.f32 %v1344_v23, %v279_v3 }
 0x150   :  { %918 = vst [vmem:[#allocation9] sm:$0xff] %v854_v1 }
 0x151   :  { %919 = vst [vmem:[#allocation9 + $0x8] sm:$0xff] %v855_v2  ;;  %v369_v14 = vadd.f32 %v368_v4, %v280_v5 }
 0x152   :  { %v687_v6 = vpop.f32.mrf.mxu2  ;;  %v776_v7 = vpop.f32.mrf.mxu3 }
 0x153   :  { %v688_v8 = vadd.f32 %v687_v6, %v1369_v55  ;;  %v777_v9 = vadd.f32 %v776_v7, %v1371_v56  ;;  %v418_v18 = vmax.f32 %v369_v14, 0.0 }
 0x155   :  { %v856_v10 = vmax.f32 %v688_v8, 0.0  ;;  %v857_v11 = vmax.f32 %v777_v9, 0.0 }
 0x156   :  { %v281_v12 = vpop.f32.mrf.mxu0  ;;  %v1075_v13 = vld [vmem:[#allocation2 + $0x20] sm:$0xff] }
 0x157   :  { %v282_v15 = vadd.f32 %v1344_v23, %v281_v12  ;;  %v370_v16 = vpop.f32.mrf.mxu1  ;;  %920 = vst [vmem:[#allocation9 + $0x10] sm:$0xff] %v856_v10  ;;  %729 = vmatmul.bf16.gmra.mxu2 %v1075_v13  ;;  %818 = vmatmul.bf16.gmra.mxu3 %v1075_v13 }
 0x158   :  { %921 = vst [vmem:[#allocation9 + $0x18] sm:$0xff] %v857_v11 }
 0x159   :  { %v371_v17 = vadd.f32 %v370_v16, %v282_v15 }
 0x15a   :  { %v690_v20 = vpop.f32.mrf.mxu2  ;;  %v779_v21 = vpop.f32.mrf.mxu3 }
 0x15b   :  { %v419_v19 = vmax.f32 %v371_v17, 0.0  ;;  %v691_v22 = vadd.f32 %v690_v20, %v1369_v55  ;;  %v780_v24 = vadd.f32 %v779_v21, %v1371_v56 }
 0x15d   :  { %v1135_v25 = vpack.c.bf16 %v419_v19, %v418_v18  ;;  %v858_v26 = vmax.f32 %v691_v22, 0.0  ;;  %v859_v27 = vmax.f32 %v780_v24, 0.0 }
 0x15e   :  { %v284_v28 = vpop.f32.mrf.mxu0 }
 0x15f   :  { %1171 = vst [vmem:[#allocation2 + $0x10] sm:$0xff] %v1135_v25   ;;  %v373_v29 = vpop.f32.mrf.mxu1  ;;  %v285_v30 = vadd.f32 %v1344_v23, %v284_v28 }
 0x160   :  { %922 = vst [vmem:[#allocation9 + $0x20] sm:$0xff] %v858_v26 }
 0x161   :  { %923 = vst [vmem:[#allocation9 + $0x28] sm:$0xff] %v859_v27  ;;  %v374_v39 = vadd.f32 %v373_v29, %v285_v30 }
 0x162   :  { %v692_v31 = vpop.f32.mrf.mxu2  ;;  %v781_v32 = vpop.f32.mrf.mxu3 }
 0x163   :  { %v693_v33 = vadd.f32 %v692_v31, %v1369_v55  ;;  %v782_v34 = vadd.f32 %v781_v32, %v1371_v56  ;;  %v420_v43 = vmax.f32 %v374_v39, 0.0 }
 0x165   :  { %v860_v35 = vmax.f32 %v693_v33, 0.0  ;;  %v861_v36 = vmax.f32 %v782_v34, 0.0 }
 0x166   :  { %v286_v37 = vpop.f32.mrf.mxu0  ;;  %v1076_v38 = vld [vmem:[#allocation2 + $0x10] sm:$0xff] }
 0x167   :  { %v287_v40 = vadd.f32 %v1344_v23, %v286_v37  ;;  %v375_v41 = vpop.f32.mrf.mxu1  ;;  %924 = vst [vmem:[#allocation9 + $0x30] sm:$0xff] %v860_v35  ;;  %734 = vmatmul.bf16.gmra.mxu2 %v1076_v38  ;;  %823 = vmatmul.bf16.gmra.mxu3 %v1076_v38 }
 0x168   :  { %925 = vst [vmem:[#allocation9 + $0x38] sm:$0xff] %v861_v36 }
 0x169   :  { %v376_v42 = vadd.f32 %v375_v41, %v287_v40 }
 0x16a   :  { %v695_v45 = vpop.f32.mrf.mxu2  ;;  %v784_v46 = vpop.f32.mrf.mxu3 }
 0x16b   :  { %v421_v44 = vmax.f32 %v376_v42, 0.0  ;;  %v696_v47 = vadd.f32 %v695_v45, %v1369_v55  ;;  %v785_v48 = vadd.f32 %v784_v46, %v1371_v56 }
 0x16d   :  { %v1140_v49 = vpack.c.bf16 %v421_v44, %v420_v43  ;;  %v862_v50 = vmax.f32 %v696_v47, 0.0  ;;  %v863_v51 = vmax.f32 %v785_v48, 0.0 }
 0x16e   :  { %v289_v52 = vpop.f32.mrf.mxu0 }
 0x16f   :  { %1172 = vst [vmem:[#allocation2 + $0x38] sm:$0xff] %v1140_v49   ;;  %v378_v53 = vpop.f32.mrf.mxu1  ;;  %v290_v54 = vadd.f32 %v1344_v23, %v289_v52 }
 0x170   :  { %926 = vst [vmem:[#allocation9 + $0x40] sm:$0xff] %v862_v50 }
 0x171   :  { %927 = vst [vmem:[#allocation9 + $0x48] sm:$0xff] %v863_v51  ;;  %v379_v1 = vadd.f32 %v378_v53, %v290_v54 }
 0x172   :  { %v697_v57 = vpop.f32.mrf.mxu2  ;;  %v786_v58 = vpop.f32.mrf.mxu3 }
 0x173   :  { %v698_v59 = vadd.f32 %v697_v57, %v1369_v55  ;;  %v787_v60 = vadd.f32 %v786_v58, %v1371_v56  ;;  %v422_v5 = vmax.f32 %v379_v1, 0.0 }
 0x175   :  { %v864_v61 = vmax.f32 %v698_v59, 0.0  ;;  %v865_v62 = vmax.f32 %v787_v60, 0.0 }
 0x176   :  { %v291_v63 = vpop.f32.mrf.mxu0  ;;  %v1077_v0 = vld [vmem:[#allocation2 + $0x38] sm:$0xff] }
 0x177   :  { %v292_v2 = vadd.f32 %v1344_v23, %v291_v63  ;;  %v380_v3 = vpop.f32.mrf.mxu1  ;;  %928 = vst [vmem:[#allocation9 + $0x50] sm:$0xff] %v864_v61  ;;  %739 = vmatmul.bf16.gmra.mxu2 %v1077_v0  ;;  %828 = vmatmul.bf16.gmra.mxu3 %v1077_v0 }
 0x178   :  { %929 = vst [vmem:[#allocation9 + $0x58] sm:$0xff] %v865_v62 }
 0x179   :  { %v381_v4 = vadd.f32 %v380_v3, %v292_v2 }
 0x17a   :  { %v700_v7 = vpop.f32.mrf.mxu2  ;;  %v789_v8 = vpop.f32.mrf.mxu3 }
 0x17b   :  { %v423_v6 = vmax.f32 %v381_v4, 0.0  ;;  %v701_v9 = vadd.f32 %v700_v7, %v1369_v55  ;;  %v790_v10 = vadd.f32 %v789_v8, %v1371_v56 }
 0x17d   :  { %v1145_v11 = vpack.c.bf16 %v423_v6, %v422_v5  ;;  %v866_v12 = vmax.f32 %v701_v9, 0.0  ;;  %v867_v13 = vmax.f32 %v790_v10, 0.0 }
 0x17e   :  { %v294_v14 = vpop.f32.mrf.mxu0 }
 0x17f   :  { %1173 = vst [vmem:[#allocation2 + $0x60] sm:$0xff] %v1145_v11   ;;  %v383_v15 = vpop.f32.mrf.mxu1  ;;  %v295_v16 = vadd.f32 %v1344_v23, %v294_v14 }
 0x180   :  { %930 = vst [vmem:[#allocation9 + $0x60] sm:$0xff] %v866_v12 }
 0x181   :  { %931 = vst [vmem:[#allocation9 + $0x68] sm:$0xff] %v867_v13  ;;  %v384_v26 = vadd.f32 %v383_v15, %v295_v16 }
 0x182   :  { %v702_v17 = vpop.f32.mrf.mxu2  ;;  %v791_v18 = vpop.f32.mrf.mxu3 }
 0x183   :  { %v703_v19 = vadd.f32 %v702_v17, %v1369_v55  ;;  %v792_v20 = vadd.f32 %v791_v18, %v1371_v56  ;;  %v424_v30 = vmax.f32 %v384_v26, 0.0 }
 0x185   :  { %v868_v21 = vmax.f32 %v703_v19, 0.0  ;;  %v869_v22 = vmax.f32 %v792_v20, 0.0 }
 0x186   :  { %v296_v24 = vpop.f32.mrf.mxu0  ;;  %v1078_v25 = vld [vmem:[#allocation2 + $0x60] sm:$0xff] }
 0x187   :  { %v297_v27 = vadd.f32 %v1344_v23, %v296_v24  ;;  %v385_v28 = vpop.f32.mrf.mxu1  ;;  %932 = vst [vmem:[#allocation9 + $0x70] sm:$0xff] %v868_v21  ;;  %744 = vmatmul.bf16.gmra.mxu2 %v1078_v25  ;;  %833 = vmatmul.bf16.gmra.mxu3 %v1078_v25 }
 0x188   :  { %933 = vst [vmem:[#allocation9 + $0x78] sm:$0xff] %v869_v22 }
 0x189   :  { %v386_v29 = vadd.f32 %v385_v28, %v297_v27 }
 0x18a   :  { %v705_v32 = vpop.f32.mrf.mxu2  ;;  %v794_v33 = vpop.f32.mrf.mxu3 }
 0x18b   :  { %v425_v31 = vmax.f32 %v386_v29, 0.0  ;;  %v706_v34 = vadd.f32 %v705_v32, %v1369_v55  ;;  %v795_v35 = vadd.f32 %v794_v33, %v1371_v56 }
 0x18d   :  { %v1150_v36 = vpack.c.bf16 %v425_v31, %v424_v30  ;;  %v870_v37 = vmax.f32 %v706_v34, 0.0  ;;  %v871_v38 = vmax.f32 %v795_v35, 0.0 }
 0x18e   :  { %v299_v39 = vpop.f32.mrf.mxu0 }
 0x18f   :  { %1174 = vst [vmem:[#allocation2 + $0x70] sm:$0xff] %v1150_v36   ;;  %v388_v40 = vpop.f32.mrf.mxu1  ;;  %v300_v41 = vadd.f32 %v1344_v23, %v299_v39 }
 0x190   :  { %934 = vst [vmem:[#allocation9 + $0x80] sm:$0xff] %v870_v37 }
 0x191   :  { %935 = vst [vmem:[#allocation9 + $0x88] sm:$0xff] %v871_v38  ;;  %v389_v50 = vadd.f32 %v388_v40, %v300_v41 }
 0x192   :  { %v707_v42 = vpop.f32.mrf.mxu2  ;;  %v796_v43 = vpop.f32.mrf.mxu3 }
 0x193   :  { %v708_v44 = vadd.f32 %v707_v42, %v1369_v55  ;;  %v797_v45 = vadd.f32 %v796_v43, %v1371_v56  ;;  %v426_v54 = vmax.f32 %v389_v50, 0.0 }
 0x195   :  { %v872_v46 = vmax.f32 %v708_v44, 0.0  ;;  %v873_v47 = vmax.f32 %v797_v45, 0.0 }
 0x196   :  { %v301_v48 = vpop.f32.mrf.mxu0  ;;  %v1079_v49 = vld [vmem:[#allocation2 + $0x70] sm:$0xff] }
 0x197   :  { %v302_v51 = vadd.f32 %v1344_v23, %v301_v48  ;;  %v390_v52 = vpop.f32.mrf.mxu1  ;;  %936 = vst [vmem:[#allocation9 + $0x90] sm:$0xff] %v872_v46  ;;  %749 = vmatmul.bf16.gmra.mxu2 %v1079_v49  ;;  %838 = vmatmul.bf16.gmra.mxu3 %v1079_v49 }
 0x198   :  { %937 = vst [vmem:[#allocation9 + $0x98] sm:$0xff] %v873_v47 }
 0x199   :  { %v391_v53 = vadd.f32 %v390_v52, %v302_v51 }
 0x19a   :  { %v710_v58 = vpop.f32.mrf.mxu2  ;;  %v799_v59 = vpop.f32.mrf.mxu3 }
 0x19b   :  { %v427_v57 = vmax.f32 %v391_v53, 0.0  ;;  %v711_v60 = vadd.f32 %v710_v58, %v1369_v55  ;;  %v800_v61 = vadd.f32 %v799_v59, %v1371_v56 }
 0x19d   :  { %v1155_v62 = vpack.c.bf16 %v427_v57, %v426_v54  ;;  %v874_v63 = vmax.f32 %v711_v60, 0.0  ;;  %v875_v0 = vmax.f32 %v800_v61, 0.0 }
 0x19e   :  { %v304_v1 = vpop.f32.mrf.mxu0 }
 0x19f   :  { %1175 = vst [vmem:[#allocation2 + $0x78] sm:$0xff] %v1155_v62   ;;  %v393_v2 = vpop.f32.mrf.mxu1  ;;  %v305_v3 = vadd.f32 %v1344_v23, %v304_v1 }
 0x1a0   :  { %938 = vst [vmem:[#allocation9 + $0xa0] sm:$0xff] %v874_v63 }
 0x1a1   :  { %939 = vst [vmem:[#allocation9 + $0xa8] sm:$0xff] %v875_v0  ;;  %v394_v12 = vadd.f32 %v393_v2, %v305_v3 }
 0x1a2   :  { %v712_v4 = vpop.f32.mrf.mxu2  ;;  %v801_v5 = vpop.f32.mrf.mxu3 }
 0x1a3   :  { %v713_v6 = vadd.f32 %v712_v4, %v1369_v55  ;;  %v802_v7 = vadd.f32 %v801_v5, %v1371_v56  ;;  %v428_v16 = vmax.f32 %v394_v12, 0.0 }
 0x1a5   :  { %v876_v8 = vmax.f32 %v713_v6, 0.0  ;;  %v877_v9 = vmax.f32 %v802_v7, 0.0 }
 0x1a6   :  { %v306_v10 = vpop.f32.mrf.mxu0  ;;  %v1080_v11 = vld [vmem:[#allocation2 + $0x78] sm:$0xff] }
 0x1a7   :  { %v307_v13 = vadd.f32 %v1344_v23, %v306_v10  ;;  %940 = vst [vmem:[#allocation9 + $0xb0] sm:$0xff] %v876_v8  ;;  %v395_v14 = vpop.f32.mrf.mxu1  ;;  %754 = vmatmul.bf16.gmra.mxu2 %v1080_v11  ;;  %843 = vmatmul.bf16.gmra.mxu3 %v1080_v11 }
 0x1a8   :  { %941 = vst [vmem:[#allocation9 + $0xb8] sm:$0xff] %v877_v9 }
 0x1a9   :  { %v396_v15 = vadd.f32 %v395_v14, %v307_v13 }
 0x1aa   :  { %v715_v18 = vpop.f32.mrf.mxu2  ;;  %v804_v19 = vpop.f32.mrf.mxu3 }
 0x1ab   :  { %v429_v17 = vmax.f32 %v396_v15, 0.0  ;;  %v716_v20 = vadd.f32 %v715_v18, %v1369_v55  ;;  %v805_v21 = vadd.f32 %v804_v19, %v1371_v56 }
 0x1ad   :  { %v1160_v22 = vpack.c.bf16 %v429_v17, %v428_v16  ;;  %v878_v24 = vmax.f32 %v716_v20, 0.0  ;;  %v879_v25 = vmax.f32 %v805_v21, 0.0 }
 0x1af   :  { %1176 = vst [vmem:[#allocation2 + $0x28] sm:$0xff] %v1160_v22  }
 0x1b0   :  { %942 = vst [vmem:[#allocation9 + $0xc0] sm:$0xff] %v878_v24 }
 0x1b1   :  { %943 = vst [vmem:[#allocation9 + $0xc8] sm:$0xff] %v879_v25 }
 0x1b2   :  { %v717_v23 = vpop.f32.mrf.mxu2  ;;  %v806_v26 = vpop.f32.mrf.mxu3 }
 0x1b3   :  { %v718_v27 = vadd.f32 %v717_v23, %v1369_v55  ;;  %v807_v28 = vadd.f32 %v806_v26, %v1371_v56 }
 0x1b5   :  { %v880_v29 = vmax.f32 %v718_v27, 0.0  ;;  %v881_v30 = vmax.f32 %v807_v28, 0.0 }
 0x1b6   :  { %v1081_v31 = vld [vmem:[#allocation2 + $0x28] sm:$0xff] }
 0x1b7   :  { %944 = vst [vmem:[#allocation9 + $0xd0] sm:$0xff] %v880_v29  ;;  %759 = vmatmul.bf16.gmra.mxu2 %v1081_v31  ;;  %848 = vmatmul.bf16.gmra.mxu3 %v1081_v31 }
 0x1b8   :  { %945 = vst [vmem:[#allocation9 + $0xd8] sm:$0xff] %v881_v30 }
 0x1ba   :  { %v720_v32 = vpop.f32.mrf.mxu2  ;;  %v809_v33 = vpop.f32.mrf.mxu3 }
 0x1bb   :  { %v721_v34 = vadd.f32 %v720_v32, %v1369_v55  ;;  %v810_v35 = vadd.f32 %v809_v33, %v1371_v56 }
 0x1bd   :  { %v882_v36 = vmax.f32 %v721_v34, 0.0  ;;  %v883_v37 = vmax.f32 %v810_v35, 0.0 }
 0x1bf   :  { %946 = vst [vmem:[#allocation9 + $0xe0] sm:$0xff] %v882_v36 }
 0x1c0   :  { %947 = vst [vmem:[#allocation9 + $0xe8] sm:$0xff] %v883_v37 }
 0x1c2   :  { %v722_v38 = vpop.f32.mrf.mxu2  ;;  %v811_v39 = vpop.f32.mrf.mxu3 }
 0x1c3   :  { %v723_v40 = vadd.f32 %v722_v38, %v1369_v55  ;;  %v812_v41 = vadd.f32 %v811_v39, %v1371_v56 }
 0x1c5   :  { %v884_v42 = vmax.f32 %v723_v40, 0.0  ;;  %v885_v43 = vmax.f32 %v812_v41, 0.0 }
 0x1c7   :  { %948 = vst [vmem:[#allocation9 + $0xf0] sm:$0xff] %v884_v42 }
 0x1c8   :  { %949 = vst [vmem:[#allocation9 + $0xf8] sm:$0xff] %v885_v43 }
 0x1ca   :  { %v725_v44 = vpop.f32.mrf.mxu2  ;;  %v814_v45 = vpop.f32.mrf.mxu3 }
 0x1cb   :  { %v726_v46 = vadd.f32 %v725_v44, %v1369_v55  ;;  %v815_v47 = vadd.f32 %v814_v45, %v1371_v56 }
 0x1cd   :  { %v886_v48 = vmax.f32 %v726_v46, 0.0  ;;  %v887_v49 = vmax.f32 %v815_v47, 0.0 }
 0x1cf   :  { %950 = vst [vmem:[#allocation9 + $0x100] sm:$0xff] %v886_v48 }
 0x1d0   :  { %951 = vst [vmem:[#allocation9 + $0x108] sm:$0xff] %v887_v49 }
 0x1d2   :  { %v727_v50 = vpop.f32.mrf.mxu2  ;;  %v816_v51 = vpop.f32.mrf.mxu3 }
 0x1d3   :  { %v728_v52 = vadd.f32 %v727_v50, %v1369_v55  ;;  %v817_v53 = vadd.f32 %v816_v51, %v1371_v56 }
 0x1d5   :  { %v888_v54 = vmax.f32 %v728_v52, 0.0  ;;  %v889_v57 = vmax.f32 %v817_v53, 0.0 }
 0x1d7   :  { %952 = vst [vmem:[#allocation9 + $0x110] sm:$0xff] %v888_v54 }
 0x1d8   :  { %953 = vst [vmem:[#allocation9 + $0x118] sm:$0xff] %v889_v57 }
 0x1da   :  { %v730_v58 = vpop.f32.mrf.mxu2  ;;  %v819_v59 = vpop.f32.mrf.mxu3 }
 0x1db   :  { %v731_v60 = vadd.f32 %v730_v58, %v1369_v55  ;;  %v820_v61 = vadd.f32 %v819_v59, %v1371_v56 }
 0x1dd   :  { %v890_v62 = vmax.f32 %v731_v60, 0.0  ;;  %v891_v63 = vmax.f32 %v820_v61, 0.0 }
 0x1df   :  { %954 = vst [vmem:[#allocation9 + $0x120] sm:$0xff] %v890_v62 }
 0x1e0   :  { %955 = vst [vmem:[#allocation9 + $0x128] sm:$0xff] %v891_v63 }
 0x1e2   :  { %v732_v0 = vpop.f32.mrf.mxu2  ;;  %v821_v1 = vpop.f32.mrf.mxu3 }
 0x1e3   :  { %v733_v2 = vadd.f32 %v732_v0, %v1369_v55  ;;  %v822_v3 = vadd.f32 %v821_v1, %v1371_v56 }
 0x1e5   :  { %v892_v4 = vmax.f32 %v733_v2, 0.0  ;;  %v893_v5 = vmax.f32 %v822_v3, 0.0 }
 0x1e7   :  { %956 = vst [vmem:[#allocation9 + $0x130] sm:$0xff] %v892_v4 }
 0x1e8   :  { %957 = vst [vmem:[#allocation9 + $0x138] sm:$0xff] %v893_v5 }
 0x1ea   :  { %v735_v6 = vpop.f32.mrf.mxu2  ;;  %v824_v7 = vpop.f32.mrf.mxu3 }
 0x1eb   :  { %v736_v8 = vadd.f32 %v735_v6, %v1369_v55  ;;  %v825_v9 = vadd.f32 %v824_v7, %v1371_v56 }
 0x1ed   :  { %v894_v10 = vmax.f32 %v736_v8, 0.0  ;;  %v895_v11 = vmax.f32 %v825_v9, 0.0 }
 0x1ef   :  { %958 = vst [vmem:[#allocation9 + $0x140] sm:$0xff] %v894_v10 }
 0x1f0   :  { %959 = vst [vmem:[#allocation9 + $0x148] sm:$0xff] %v895_v11 }
 0x1f2   :  { %v737_v12 = vpop.f32.mrf.mxu2  ;;  %v826_v13 = vpop.f32.mrf.mxu3 }
 0x1f3   :  { %v738_v14 = vadd.f32 %v737_v12, %v1369_v55  ;;  %v827_v15 = vadd.f32 %v826_v13, %v1371_v56 }
 0x1f5   :  { %v896_v16 = vmax.f32 %v738_v14, 0.0  ;;  %v897_v17 = vmax.f32 %v827_v15, 0.0 }
 0x1f7   :  { %960 = vst [vmem:[#allocation9 + $0x150] sm:$0xff] %v896_v16 }
 0x1f8   :  { %961 = vst [vmem:[#allocation9 + $0x158] sm:$0xff] %v897_v17 }
 0x1fa   :  { %v740_v18 = vpop.f32.mrf.mxu2  ;;  %v829_v19 = vpop.f32.mrf.mxu3 }
 0x1fb   :  { %v741_v20 = vadd.f32 %v740_v18, %v1369_v55  ;;  %v830_v21 = vadd.f32 %v829_v19, %v1371_v56 }
 0x1fd   :  { %v898_v22 = vmax.f32 %v741_v20, 0.0  ;;  %v899_v24 = vmax.f32 %v830_v21, 0.0 }
 0x1ff   :  { %962 = vst [vmem:[#allocation9 + $0x160] sm:$0xff] %v898_v22 }
 0x200   :  { %963 = vst [vmem:[#allocation9 + $0x168] sm:$0xff] %v899_v24 }
 0x202   :  { %v742_v25 = vpop.f32.mrf.mxu2  ;;  %v831_v23 = vpop.f32.mrf.mxu3 }
 0x203   :  { %v743_v26 = vadd.f32 %v742_v25, %v1369_v55  ;;  %v832_v27 = vadd.f32 %v831_v23, %v1371_v56 }
 0x205   :  { %v900_v28 = vmax.f32 %v743_v26, 0.0  ;;  %v901_v29 = vmax.f32 %v832_v27, 0.0 }
 0x207   :  { %964 = vst [vmem:[#allocation9 + $0x170] sm:$0xff] %v900_v28 }
 0x208   :  { %965 = vst [vmem:[#allocation9 + $0x178] sm:$0xff] %v901_v29 }
 0x20a   :  { %v745_v30 = vpop.f32.mrf.mxu2  ;;  %v834_v31 = vpop.f32.mrf.mxu3 }
 0x20b   :  { %v746_v32 = vadd.f32 %v745_v30, %v1369_v55  ;;  %v835_v33 = vadd.f32 %v834_v31, %v1371_v56 }
 0x20d   :  { %v902_v34 = vmax.f32 %v746_v32, 0.0  ;;  %v903_v35 = vmax.f32 %v835_v33, 0.0 }
 0x20f   :  { %966 = vst [vmem:[#allocation9 + $0x180] sm:$0xff] %v902_v34 }
 0x210   :  { %967 = vst [vmem:[#allocation9 + $0x188] sm:$0xff] %v903_v35 }
 0x212   :  { %v747_v36 = vpop.f32.mrf.mxu2  ;;  %v836_v37 = vpop.f32.mrf.mxu3 }
 0x213   :  { %v748_v38 = vadd.f32 %v747_v36, %v1369_v55  ;;  %v837_v39 = vadd.f32 %v836_v37, %v1371_v56 }
 0x215   :  { %v904_v40 = vmax.f32 %v748_v38, 0.0  ;;  %v905_v41 = vmax.f32 %v837_v39, 0.0 }
 0x217   :  { %968 = vst [vmem:[#allocation9 + $0x190] sm:$0xff] %v904_v40 }
 0x218   :  { %969 = vst [vmem:[#allocation9 + $0x198] sm:$0xff] %v905_v41 }
 0x21a   :  { %v750_v42 = vpop.f32.mrf.mxu2  ;;  %v839_v43 = vpop.f32.mrf.mxu3 }
 0x21b   :  { %v751_v44 = vadd.f32 %v750_v42, %v1369_v55  ;;  %v840_v45 = vadd.f32 %v839_v43, %v1371_v56 }
 0x21d   :  { %v906_v46 = vmax.f32 %v751_v44, 0.0  ;;  %v907_v47 = vmax.f32 %v840_v45, 0.0 }
 0x21f   :  { %970 = vst [vmem:[#allocation9 + $0x1a0] sm:$0xff] %v906_v46 }
 0x220   :  { %971 = vst [vmem:[#allocation9 + $0x1a8] sm:$0xff] %v907_v47 }
 0x222   :  { %v752_v48 = vpop.f32.mrf.mxu2  ;;  %v841_v49 = vpop.f32.mrf.mxu3 }
 0x223   :  { %v753_v50 = vadd.f32 %v752_v48, %v1369_v55  ;;  %v842_v51 = vadd.f32 %v841_v49, %v1371_v56 }
 0x225   :  { %v908_v52 = vmax.f32 %v753_v50, 0.0  ;;  %v909_v53 = vmax.f32 %v842_v51, 0.0 }
 0x227   :  { %972 = vst [vmem:[#allocation9 + $0x1b0] sm:$0xff] %v908_v52 }
 0x228   :  { %973 = vst [vmem:[#allocation9 + $0x1b8] sm:$0xff] %v909_v53 }
 0x22a   :  { %v755_v54 = vpop.f32.mrf.mxu2  ;;  %v844_v57 = vpop.f32.mrf.mxu3 }
 0x22b   :  { %v756_v58 = vadd.f32 %v755_v54, %v1369_v55  ;;  %v845_v59 = vadd.f32 %v844_v57, %v1371_v56 }
 0x22d   :  { %v910_v60 = vmax.f32 %v756_v58, 0.0  ;;  %v911_v61 = vmax.f32 %v845_v59, 0.0 }
 0x22f   :  { %974 = vst [vmem:[#allocation9 + $0x1c0] sm:$0xff] %v910_v60 }
 0x230   :  { %975 = vst [vmem:[#allocation9 + $0x1c8] sm:$0xff] %v911_v61 }
 0x232   :  { %v757_v62 = vpop.f32.mrf.mxu2  ;;  %v846_v63 = vpop.f32.mrf.mxu3 }
 0x233   :  { %v758_v0 = vadd.f32 %v757_v62, %v1369_v55  ;;  %v847_v1 = vadd.f32 %v846_v63, %v1371_v56 }
 0x235   :  { %v912_v2 = vmax.f32 %v758_v0, 0.0  ;;  %v913_v3 = vmax.f32 %v847_v1, 0.0 }
 0x237   :  { %976 = vst [vmem:[#allocation9 + $0x1d0] sm:$0xff] %v912_v2 }
 0x238   :  { %977 = vst [vmem:[#allocation9 + $0x1d8] sm:$0xff] %v913_v3 }
 0x23a   :  { %v760_v4 = vpop.f32.mrf.mxu2  ;;  %v849_v5 = vpop.f32.mrf.mxu3 }
 0x23b   :  { %v761_v6 = vadd.f32 %v760_v4, %v1369_v55  ;;  %v850_v7 = vadd.f32 %v849_v5, %v1371_v56 }
 0x23d   :  { %v914_v8 = vmax.f32 %v761_v6, 0.0  ;;  %v915_v9 = vmax.f32 %v850_v7, 0.0 }
 0x23f   :  { %978 = vst [vmem:[#allocation9 + $0x1e0] sm:$0xff] %v914_v8 }
 0x240   :  { %979 = vst [vmem:[#allocation9 + $0x1e8] sm:$0xff] %v915_v9 }
 0x242   :  { %v762_v10 = vpop.f32.mrf.mxu2  ;;  %v851_v11 = vpop.f32.mrf.mxu3 }
 0x243   :  { %v763_v12 = vadd.f32 %v762_v10, %v1369_v55  ;;  %v852_v13 = vadd.f32 %v851_v11, %v1371_v56 }
 0x245   :  { %v916_v14 = vmax.f32 %v763_v12, 0.0  ;;  %v917_v15 = vmax.f32 %v852_v13, 0.0 }
 0x247   :  { %980 = vst [vmem:[#allocation9 + $0x1f0] sm:$0xff] %v916_v14 }
 0x248   :  { %981 = vst [vmem:[#allocation9 + $0x1f8] sm:$0xff] %v917_v15 }
 0x249   :  { %994 = dma.vmem_to_hbm [thread:$0]  %s987_s12, 8192, %s989_s15, [#allocation5], %s1292_s30, %s1292_s30, %s1293_s6  }
 0x24a   :  { %1286 = dma.done.wait [#allocation5], 8192  }
 0x24b   :  { %1287 = vsyncadd [#allocation5], 4294959104 }
 0x24c   :  { %999 = vsyncpa [#allocation4], 1 }
 0x24d   :  { %1000 = vsyncpa [#allocation7], 1 }
 0x24e   :  { %1001 = vsyncpa [#allocation5], 1 }

// kernel: tpu_custom_call.1
= control target key start
LH: loop header
LB: loop body
LE: loop exit
PB: predicated region body
PF: predicated region fallthrough
CT: control target
= control target key end

     0   :  { %10 = vsyncpa [#allocation4], 0  ;;  %s1455_s0 = inlined_call_operand.hbm [shape: f32[256,256], index: 0, kind: input, shape index: {}]   ;;  %s1456_s1 = inlined_call_operand.hbm [shape: f32[256,128], index: 1, kind: input, shape index: {}]   ;;  %s1457_s2 = inlined_call_operand.vmem [shape: f32[1,128], index: 2, kind: input, shape index: {}]   ;;  %s1458_s3 = inlined_call_operand.hbm [shape: f32[128,256], index: 3, kind: input, shape index: {}]   ;;  %s1459_s4 = inlined_call_operand.vmem [shape: f32[1,256], index: 4, kind: input, shape index: {}]   ;;  %s1460_s5 = inlined_call_operand.hbm [shape: f32[256,256], index: 5, kind: output, shape index: {}]  }
   0x1   :  { %11 = vsyncpa [#allocation7], 0  ;;  %s30_s20 = sshll.u32 %s1456_s1, 4  ;;  %s31_s20 = int_to_ptr.hbm [resolvable:$true] %s30_s20 }
   0x2   :  { %12 = vsyncpa [#allocation5], 0  ;;  %s1288_s21 = smov [#allocation6]   ;;  %s17_s25 = sshll.u32 %s1455_s0, 4  ;;  %s18_s25 = int_to_ptr.hbm [resolvable:$true] %s17_s25 }
   0x3   :  { %s32_s22 = sshll.u32 %s1288_s21, 4  ;;  %s1289_s26 = smov 128   ;;  %s33_s22 = int_to_ptr.vmem [resolvable:$true] %s32_s22 }
   0x4   :  { %s1290_s27 = smov 8   ;;  %s1291_s28 = smov [#allocation3]  }
   0x5   :  { %38 = dma.hbm_to_vmem [thread:$0]  %s31_s20, 4096, %s33_s22, [#allocation7], %s1289_s26, %s1289_s26, %s1290_s27  }
   0x6   :  { %s19_s29 = sshll.u32 %s1291_s28, 4  ;;  %s1292_s30 = smov 256   ;;  %s20_s29 = int_to_ptr.vmem [resolvable:$true] %s19_s29 }
   0x7   :  { %s1293_s6 = smov 16   ;;  %s45_s8 = sshll.u32 %s1458_s3, 4  ;;  %s46_s8 = int_to_ptr.hbm [resolvable:$true] %s45_s8 }
   0x8   :  { %25 = dma.hbm_to_vmem [thread:$0]  %s18_s25, 8192, %s20_s29, [#allocation4], %s1292_s30, %s1292_s30, %s1293_s6  }
   0x9   :  { %s1294_s9 = smov [#allocation8]  }
   0xa   :  { %s47_s0 = sshll.u32 %s1294_s9, 4  ;;  %s48_s0 = int_to_ptr.vmem [resolvable:$true] %s47_s0 }
   0xb   :  { %53 = dma.hbm_to_vmem [thread:$0]  %s46_s8, 4096, %s48_s0, [#allocation7], %s1292_s30, %s1292_s30, %s1293_s6  }
   0xc   :  { %1282 = dma.done.wait [#allocation4], 8192  }
   0xd   :  { %1283 = vsyncadd [#allocation4], 4294959104 }
   0xe   :  { %1284 = dma.done.wait [#allocation7], 8192  }
   0xf   :  { %1285 = vsyncadd [#allocation7], 4294959104  ;;  %v182_v0 = vld [vmem:[#allocation6 + $0x70] sm:$0xff]  ;;  %v183_v1 = vld [vmem:[#allocation6 + $0x78] sm:$0xff]  ;;  %s988_s15 = sshll.u32 %s1460_s5, 4  ;;  %s989_s15 = int_to_ptr.hbm [resolvable:$true] %s988_s15 }
  0x10   :  { %v198_v2 = vld [vmem:[#allocation6 + $0xf0] sm:$0xff]  ;;  %v207_v3 = vpack.c.bf16 %v183_v1, %v182_v0  ;;  %v199_v4 = vld [vmem:[#allocation6 + $0xf8] sm:$0xff]  ;;  %v180_v5 = vld [vmem:[#allocation6 + $0x60] sm:$0xff] }
  0x11   :  { %v181_v6 = vld [vmem:[#allocation6 + $0x68] sm:$0xff]  ;;  %v215_v7 = vpack.c.bf16 %v199_v4, %v198_v2  ;;  %v196_v8 = vld [vmem:[#allocation6 + $0xe0] sm:$0xff]  ;;  %v178_v12 = vld [vmem:[#allocation6 + $0x50] sm:$0xff] }
  0x12   :  { %v197_v9 = vld [vmem:[#allocation6 + $0xe8] sm:$0xff]  ;;  %220 = vmatpush.bf16.msra.mxu0 %v207_v3  ;;  %v206_v10 = vpack.c.bf16 %v181_v6, %v180_v5  ;;  %v179_v13 = vld [vmem:[#allocation6 + $0x58] sm:$0xff]  ;;  %v194_v14 = vld [vmem:[#allocation6 + $0xd0] sm:$0xff] }
  0x13   :  { %309 = vmatpush.bf16.msra.mxu1 %v215_v7  ;;  %v214_v11 = vpack.c.bf16 %v197_v9, %v196_v8  ;;  %v195_v15 = vld [vmem:[#allocation6 + $0xd8] sm:$0xff]  ;;  %v205_v16 = vpack.c.bf16 %v179_v13, %v178_v12  ;;  %v176_v18 = vld [vmem:[#allocation6 + $0x40] sm:$0xff]  ;;  %v177_v19 = vld [vmem:[#allocation6 + $0x48] sm:$0xff] }
  0x14   :  { %v213_v17 = vpack.c.bf16 %v195_v15, %v194_v14  ;;  %v192_v20 = vld [vmem:[#allocation6 + $0xc0] sm:$0xff]  ;;  %v193_v21 = vld [vmem:[#allocation6 + $0xc8] sm:$0xff]  ;;  %v204_v22 = vpack.c.bf16 %v177_v19, %v176_v18  ;;  %v174_v24 = vld [vmem:[#allocation6 + $0x30] sm:$0xff] }
  0x15   :  { %v212_v23 = vpack.c.bf16 %v193_v21, %v192_v20  ;;  %v175_v25 = vld [vmem:[#allocation6 + $0x38] sm:$0xff]  ;;  %v190_v26 = vld [vmem:[#allocation6 + $0xb0] sm:$0xff]  ;;  %v172_v30 = vld [vmem:[#allocation6 + $0x20] sm:$0xff] }
  0x16   :  { %221 = vmatpush.bf16.msra.mxu0 %v206_v10  ;;  %v191_v27 = vld [vmem:[#allocation6 + $0xb8] sm:$0xff]  ;;  %v203_v28 = vpack.c.bf16 %v175_v25, %v174_v24  ;;  %v173_v31 = vld [vmem:[#allocation6 + $0x28] sm:$0xff]  ;;  %v188_v32 = vld [vmem:[#allocation6 + $0xa0] sm:$0xff] }
  0x17   :  { %310 = vmatpush.bf16.msra.mxu1 %v214_v11  ;;  %v211_v29 = vpack.c.bf16 %v191_v27, %v190_v26  ;;  %v189_v33 = vld [vmem:[#allocation6 + $0xa8] sm:$0xff]  ;;  %v202_v34 = vpack.c.bf16 %v173_v31, %v172_v30  ;;  %v170_v36 = vld [vmem:[#allocation6 + $0x10] sm:$0xff]  ;;  %v171_v37 = vld [vmem:[#allocation6 + $0x18] sm:$0xff] }
  0x18   :  { %v210_v35 = vpack.c.bf16 %v189_v33, %v188_v32  ;;  %v186_v38 = vld [vmem:[#allocation6 + $0x90] sm:$0xff]  ;;  %v187_v39 = vld [vmem:[#allocation6 + $0x98] sm:$0xff]  ;;  %v201_v40 = vpack.c.bf16 %v171_v37, %v170_v36  ;;  %v168_v42 = vld [vmem:[#allocation6] sm:$0xff] }
  0x19   :  { %v209_v41 = vpack.c.bf16 %v187_v39, %v186_v38  ;;  %v169_v43 = vld [vmem:[#allocation6 + $0x8] sm:$0xff]  ;;  %v184_v44 = vld [vmem:[#allocation6 + $0x80] sm:$0xff]  ;;  %v74_v48 = vld [vmem:[#allocation3 + $0x10] sm:$0xff] }
  0x1a   :  { %222 = vmatpush.bf16.msra.mxu0 %v205_v16  ;;  %v185_v45 = vld [vmem:[#allocation6 + $0x88] sm:$0xff]  ;;  %v200_v46 = vpack.c.bf16 %v169_v43, %v168_v42  ;;  %v72_v47 = vld [vmem:[#allocation3] sm:$0xff]  ;;  %v75_v51 = vld [vmem:[#allocation3 + $0x18] sm:$0xff] }
  0x1b   :  { %311 = vmatpush.bf16.msra.mxu1 %v213_v17  ;;  %v208_v49 = vpack.c.bf16 %v185_v45, %v184_v44  ;;  %v73_v50 = vld [vmem:[#allocation3 + $0x8] sm:$0xff]  ;;  %v136_v52 = vpack.c.bf16 %v74_v48, %v72_v47  ;;  %v76_v54 = vld [vmem:[#allocation3 + $0x20] sm:$0xff]  ;;  %v78_v55 = vld [vmem:[#allocation3 + $0x30] sm:$0xff] }
  0x1c   :  { %v137_v53 = vpack.c.bf16 %v75_v51, %v73_v50  ;;  %v77_v56 = vld [vmem:[#allocation3 + $0x28] sm:$0xff]  ;;  %v79_v57 = vld [vmem:[#allocation3 + $0x38] sm:$0xff]  ;;  %v138_v58 = vpack.c.bf16 %v78_v55, %v76_v54  ;;  %v80_v60 = vld [vmem:[#allocation3 + $0x40] sm:$0xff] }
  0x1d   :  { %v139_v59 = vpack.c.bf16 %v79_v57, %v77_v56  ;;  %v82_v61 = vld [vmem:[#allocation3 + $0x50] sm:$0xff]  ;;  %v81_v62 = vld [vmem:[#allocation3 + $0x48] sm:$0xff]  ;;  %v83_v63 = vld [vmem:[#allocation3 + $0x58] sm:$0xff] }
  0x1e   :  { %223 = vmatpush.bf16.msra.mxu0 %v204_v22  ;;  %v140_v0 = vpack.c.bf16 %v82_v61, %v80_v60  ;;  %v141_v1 = vpack.c.bf16 %v83_v63, %v81_v62  ;;  %v84_v2 = vld [vmem:[#allocation3 + $0x60] sm:$0xff]  ;;  %v86_v3 = vld [vmem:[#allocation3 + $0x70] sm:$0xff]  ;;  %v85_v4 = vld [vmem:[#allocation3 + $0x68] sm:$0xff] }
  0x1f   :  { %312 = vmatpush.bf16.msra.mxu1 %v212_v23  ;;  %v87_v5 = vld [vmem:[#allocation3 + $0x78] sm:$0xff]  ;;  %v142_v6 = vpack.c.bf16 %v86_v3, %v84_v2  ;;  %v88_v8 = vld [vmem:[#allocation3 + $0x80] sm:$0xff]  ;;  %v90_v9 = vld [vmem:[#allocation3 + $0x90] sm:$0xff] }
  0x20   :  { %v143_v7 = vpack.c.bf16 %v87_v5, %v85_v4  ;;  %v89_v10 = vld [vmem:[#allocation3 + $0x88] sm:$0xff]  ;;  %v91_v11 = vld [vmem:[#allocation3 + $0x98] sm:$0xff]  ;;  %v144_v12 = vpack.c.bf16 %v90_v9, %v88_v8  ;;  %v92_v14 = vld [vmem:[#allocation3 + $0xa0] sm:$0xff] }
  0x21   :  { %v145_v13 = vpack.c.bf16 %v91_v11, %v89_v10  ;;  %v94_v15 = vld [vmem:[#allocation3 + $0xb0] sm:$0xff]  ;;  %v93_v16 = vld [vmem:[#allocation3 + $0xa8] sm:$0xff]  ;;  %v95_v17 = vld [vmem:[#allocation3 + $0xb8] sm:$0xff] }
  0x22   :  { %224 = vmatpush.bf16.msra.mxu0 %v203_v28  ;;  %v146_v18 = vpack.c.bf16 %v94_v15, %v92_v14  ;;  %v147_v19 = vpack.c.bf16 %v95_v17, %v93_v16  ;;  %v554_v20 = vld [vmem:[#allocation8 + $0xe0] sm:$0xff]  ;;  %v556_v21 = vld [vmem:[#allocation8 + $0xf0] sm:$0xff]  ;;  %v555_v22 = vld [vmem:[#allocation8 + $0xe8] sm:$0xff] }
  0x23   :  { %313 = vmatpush.bf16.msra.mxu1 %v211_v29  ;;  %v572_v23 = vpack.c.bf16 %v556_v21, %v554_v20  ;;  %v557_v24 = vld [vmem:[#allocation8 + $0xf8] sm:$0xff]  ;;  %v96_v26 = vld [vmem:[#allocation3 + $0xc0] sm:$0xff]  ;;  %v98_v27 = vld [vmem:[#allocation3 + $0xd0] sm:$0xff] }
  0x24   :  { %v573_v25 = vpack.c.bf16 %v557_v24, %v555_v22  ;;  %v97_v28 = vld [vmem:[#allocation3 + $0xc8] sm:$0xff]  ;;  %v99_v29 = vld [vmem:[#allocation3 + $0xd8] sm:$0xff]  ;;  %v550_v30 = vld [vmem:[#allocation8 + $0xc0] sm:$0xff] }
  0x25   :  { %676 = vmatpush.bf16.msra.mxu2 %v572_v23  ;;  %v552_v31 = vld [vmem:[#allocation8 + $0xd0] sm:$0xff]  ;;  %v551_v32 = vld [vmem:[#allocation8 + $0xc8] sm:$0xff]  ;;  %v149_v37 = vpack.c.bf16 %v99_v29, %v97_v28  ;;  %v546_v38 = vld [vmem:[#allocation8 + $0xa0] sm:$0xff] }
  0x26   :  { %225 = vmatpush.bf16.msra.mxu0 %v202_v34  ;;  %765 = vmatpush.bf16.msra.mxu3 %v573_v25  ;;  %v570_v33 = vpack.c.bf16 %v552_v31, %v550_v30  ;;  %v553_v34 = vld [vmem:[#allocation8 + $0xd8] sm:$0xff]  ;;  %v548_v39 = vld [vmem:[#allocation8 + $0xb0] sm:$0xff]  ;;  %v542_v44 = vld [vmem:[#allocation8 + $0x80] sm:$0xff] }
  0x27   :  { %314 = vmatpush.bf16.msra.mxu1 %v210_v35  ;;  %v148_v35 = vpack.c.bf16 %v98_v27, %v96_v26  ;;  %v571_v36 = vpack.c.bf16 %v553_v34, %v551_v32  ;;  %v549_v42 = vld [vmem:[#allocation8 + $0xb8] sm:$0xff]  ;;  %v544_v45 = vld [vmem:[#allocation8 + $0x90] sm:$0xff]  ;;  %v538_v50 = vld [vmem:[#allocation8 + $0x60] sm:$0xff] }
  0x28   :  { %v566_v47 = vpack.c.bf16 %v544_v45, %v542_v44  ;;  %v545_v48 = vld [vmem:[#allocation8 + $0x98] sm:$0xff]  ;;  %v540_v51 = vld [vmem:[#allocation8 + $0x70] sm:$0xff]  ;;  %v100_v55 = vld [vmem:[#allocation3 + $0xe0] sm:$0xff] }
  0x29   :  { %677 = vmatpush.bf16.msra.mxu2 %v570_v33  ;;  %v541_v54 = vld [vmem:[#allocation8 + $0x78] sm:$0xff]  ;;  %v102_v57 = vld [vmem:[#allocation3 + $0xf0] sm:$0xff]  ;;  %v534_v60 = vld [vmem:[#allocation8 + $0x40] sm:$0xff] }
  0x2a   :  { %226 = vmatpush.bf16.msra.mxu0 %v201_v40  ;;  %766 = vmatpush.bf16.msra.mxu3 %v571_v36  ;;  %v568_v40 = vpack.c.bf16 %v548_v39, %v546_v38  ;;  %v536_v61 = vld [vmem:[#allocation8 + $0x50] sm:$0xff]  ;;  %v535_v62 = vld [vmem:[#allocation8 + $0x48] sm:$0xff]  ;;  %v530_v4 = vld [vmem:[#allocation8 + $0x20] sm:$0xff] }
  0x2b   :  { %315 = vmatpush.bf16.msra.mxu1 %v209_v41  ;;  %v547_v41 = vld [vmem:[#allocation8 + $0xa8] sm:$0xff]  ;;  %v562_v63 = vpack.c.bf16 %v536_v61, %v534_v60  ;;  %v532_v5 = vld [vmem:[#allocation8 + $0x30] sm:$0xff]  ;;  %v533_v8 = vld [vmem:[#allocation8 + $0x38] sm:$0xff] }
  0x2c   :  { %v569_v43 = vpack.c.bf16 %v549_v42, %v547_v41  ;;  %v526_v10 = vld [vmem:[#allocation8] sm:$0xff]  ;;  %v528_v11 = vld [vmem:[#allocation8 + $0x10] sm:$0xff]  ;;  %v529_v14 = vld [vmem:[#allocation8 + $0x18] sm:$0xff] }
  0x2d   :  { %678 = vmatpush.bf16.msra.mxu2 %v568_v40  ;;  %v104_v16 = vld [vmem:[#allocation3 + $0x100] sm:$0xff]  ;;  %v106_v17 = vld [vmem:[#allocation3 + $0x110] sm:$0xff]  ;;  %v111_v36 = vld [vmem:[#allocation3 + $0x138] sm:$0xff] }
  0x2e   :  { %227 = vmatpush.bf16.msra.mxu0 %v200_v46  ;;  %v543_v46 = vld [vmem:[#allocation8 + $0x88] sm:$0xff]  ;;  %767 = vmatpush.bf16.msra.mxu3 %v569_v43  ;;  %v152_v20 = vpack.c.bf16 %v106_v17, %v104_v16  ;;  %v1344_v23 = vld [vmem:[%s1457_s2] ss:$0 sm:$0xff]  ;;  %v110_v32 = vld [vmem:[#allocation3 + $0x130] sm:$0xff] }
  0x2f   :  { %316 = vmatpush.bf16.msra.mxu1 %v208_v49  ;;  %v567_v49 = vpack.c.bf16 %v545_v48, %v543_v46  ;;  %v108_v31 = vld [vmem:[#allocation3 + $0x120] sm:$0xff] }
  0x30   :  { %v154_v38 = vpack.c.bf16 %v110_v32, %v108_v31 }
  0x31   :  { %228 = vmatmul.bf16.vlgmr.msra.gmra.mxu0 %v136_v52  ;;  %679 = vmatpush.bf16.msra.mxu2 %v566_v47  ;;  %v539_v52 = vld [vmem:[#allocation8 + $0x68] sm:$0xff] }
  0x32   :  { %317 = vmatmul.bf16.vlgmr.msra.gmra.mxu1 %v137_v53  ;;  %768 = vmatpush.bf16.msra.mxu3 %v567_v49  ;;  %v564_v53 = vpack.c.bf16 %v540_v51, %v538_v50  ;;  %v565_v56 = vpack.c.bf16 %v541_v54, %v539_v52  ;;  %v112_v49 = vld [vmem:[#allocation3 + $0x140] sm:$0xff]  ;;  %v114_v50 = vld [vmem:[#allocation3 + $0x150] sm:$0xff]  ;;  %v115_v54 = vld [vmem:[#allocation3 + $0x158] sm:$0xff] }
  0x35   :  { %680 = vmatpush.bf16.msra.mxu2 %v564_v53  ;;  %v113_v53 = vld [vmem:[#allocation3 + $0x148] sm:$0xff] }
  0x36   :  { %769 = vmatpush.bf16.msra.mxu3 %v565_v56  ;;  %v156_v56 = vpack.c.bf16 %v114_v50, %v112_v49 }
  0x39   :  { %681 = vmatpush.bf16.msra.mxu2 %v562_v63 }
  0x41   :  { %233 = vmatmul.bf16.gmra.mxu0 %v138_v58  ;;  %v101_v58 = vld [vmem:[#allocation3 + $0xe8] sm:$0xff] }
  0x42   :  { %322 = vmatmul.bf16.gmra.mxu1 %v139_v59  ;;  %v103_v59 = vld [vmem:[#allocation3 + $0xf8] sm:$0xff] }
  0x43   :  { %v151_v3 = vpack.c.bf16 %v103_v59, %v101_v58  ;;  %v157_v58 = vpack.c.bf16 %v115_v54, %v113_v53 }
  0x51   :  { %238 = vmatmul.bf16.gmra.mxu0 %v140_v0  ;;  %v537_v0 = vld [vmem:[#allocation8 + $0x58] sm:$0xff] }
  0x52   :  { %327 = vmatmul.bf16.gmra.mxu1 %v141_v1  ;;  %v150_v1 = vpack.c.bf16 %v102_v57, %v100_v55  ;;  %v563_v2 = vpack.c.bf16 %v537_v0, %v535_v62 }
  0x54   :  { %770 = vmatpush.bf16.msra.mxu3 %v563_v2 }
  0x61   :  { %243 = vmatmul.bf16.gmra.mxu0 %v142_v6  ;;  %v560_v6 = vpack.c.bf16 %v532_v5, %v530_v4  ;;  %v118_v4 = vld [vmem:[#allocation3 + $0x170] sm:$0xff] }
  0x62   :  { %332 = vmatmul.bf16.gmra.mxu1 %v143_v7  ;;  %v531_v7 = vld [vmem:[#allocation8 + $0x28] sm:$0xff] }
  0x63   :  { %v561_v9 = vpack.c.bf16 %v533_v8, %v531_v7  ;;  %682 = vmatpush.bf16.msra.mxu2 %v560_v6  ;;  %v117_v7 = vld [vmem:[#allocation3 + $0x168] sm:$0xff]  ;;  %v119_v8 = vld [vmem:[#allocation3 + $0x178] sm:$0xff] }
  0x65   :  { %771 = vmatpush.bf16.msra.mxu3 %v561_v9 }
  0x71   :  { %248 = vmatmul.bf16.gmra.mxu0 %v144_v12  ;;  %v527_v12 = vld [vmem:[#allocation8 + $0x8] sm:$0xff] }
  0x72   :  { %337 = vmatmul.bf16.gmra.mxu1 %v145_v13  ;;  %v558_v13 = vpack.c.bf16 %v528_v11, %v526_v10  ;;  %v559_v15 = vpack.c.bf16 %v529_v14, %v527_v12  ;;  %v159_v12 = vpack.c.bf16 %v119_v8, %v117_v7 }
  0x74   :  { %683 = vmatpush.bf16.msra.mxu2 %v558_v13  ;;  %772 = vmatpush.bf16.msra.mxu3 %v559_v15 }
  0x81   :  { %253 = vmatmul.bf16.gmra.mxu0 %v146_v18  ;;  %v105_v18 = vld [vmem:[#allocation3 + $0x108] sm:$0xff] }
  0x82   :  { %342 = vmatmul.bf16.gmra.mxu1 %v147_v19  ;;  %v107_v19 = vld [vmem:[#allocation3 + $0x118] sm:$0xff] }
  0x83   :  { %v153_v22 = vpack.c.bf16 %v107_v19, %v105_v18 }
  0x91   :  { %258 = vmatmul.bf16.gmra.mxu0 %v148_v35  ;;  %v109_v35 = vld [vmem:[#allocation3 + $0x128] sm:$0xff] }
  0x92   :  { %347 = vmatmul.bf16.gmra.mxu1 %v149_v37  ;;  %v155_v40 = vpack.c.bf16 %v111_v36, %v109_v35 }
  0xa1   :  { %263 = vmatmul.bf16.gmra.mxu0 %v150_v1 }
  0xa2   :  { %352 = vmatmul.bf16.gmra.mxu1 %v151_v3  ;;  %v116_v3 = vld [vmem:[#allocation3 + $0x160] sm:$0xff] }
  0xa3   :  { %v158_v10 = vpack.c.bf16 %v118_v4, %v116_v3 }
  0xae   :  { %v229_v21 = vpop.f32.mrf.mxu0 }
  0xaf   :  { %v318_v24 = vpop.f32.mrf.mxu1  ;;  %v230_v25 = vadd.f32 %v1344_v23, %v229_v21  ;;  %v120_v21 = vld [vmem:[#allocation3 + $0x180] sm:$0xff] }
  0xb1   :  { %268 = vmatmul.bf16.gmra.mxu0 %v152_v20  ;;  %v319_v27 = vadd.f32 %v318_v24, %v230_v25 }
  0xb2   :  { %357 = vmatmul.bf16.gmra.mxu1 %v153_v22  ;;  %v122_v22 = vld [vmem:[#allocation3 + $0x190] sm:$0xff] }
  0xb3   :  { %v398_v33 = vmax.f32 %v319_v27, 0.0  ;;  %v123_v27 = vld [vmem:[#allocation3 + $0x198] sm:$0xff] }
  0xb6   :  { %v231_v26 = vpop.f32.mrf.mxu0 }
  0xb7   :  { %v232_v28 = vadd.f32 %v1344_v23, %v231_v26  ;;  %v320_v29 = vpop.f32.mrf.mxu1  ;;  %v121_v26 = vld [vmem:[#allocation3 + $0x188] sm:$0xff] }
  0xb8   :  { %v161_v31 = vpack.c.bf16 %v123_v27, %v121_v26 }
  0xb9   :  { %v321_v30 = vadd.f32 %v320_v29, %v232_v28  ;;  %v160_v29 = vpack.c.bf16 %v122_v22, %v120_v21 }
  0xbb   :  { %v399_v34 = vmax.f32 %v321_v30, 0.0 }
  0xbd   :  { %v1085_v37 = vpack.c.bf16 %v399_v34, %v398_v33 }
  0xbe   :  { %v234_v39 = vpop.f32.mrf.mxu0 }
  0xbf   :  { %1086 = vst [vmem:[#allocation2 + $0x30] sm:$0xff] %v1085_v37   ;;  %v323_v41 = vpop.f32.mrf.mxu1  ;;  %v235_v42 = vadd.f32 %v1344_v23, %v234_v39 }
  0xc1   :  { %273 = vmatmul.bf16.gmra.mxu0 %v154_v38  ;;  %v324_v45 = vadd.f32 %v323_v41, %v235_v42  ;;  %v126_v41 = vld [vmem:[#allocation3 + $0x1b0] sm:$0xff] }
  0xc2   :  { %362 = vmatmul.bf16.gmra.mxu1 %v155_v40  ;;  %v124_v40 = vld [vmem:[#allocation3 + $0x1a0] sm:$0xff] }
  0xc3   :  { %v400_v51 = vmax.f32 %v324_v45, 0.0  ;;  %v127_v45 = vld [vmem:[#allocation3 + $0x1b8] sm:$0xff] }
  0xc6   :  { %v236_v43 = vpop.f32.mrf.mxu0  ;;  %v1066_v44 = vld [vmem:[#allocation2 + $0x30] sm:$0xff] }
  0xc7   :  { %v237_v46 = vadd.f32 %v1344_v23, %v236_v43  ;;  %v325_v47 = vpop.f32.mrf.mxu1  ;;  %684 = vmatmul.bf16.vlgmr.msra.gmra.mxu2 %v1066_v44  ;;  %773 = vmatmul.bf16.vlgmr.msra.gmra.mxu3 %v1066_v44  ;;  %v125_v44 = vld [vmem:[#allocation3 + $0x1a8] sm:$0xff] }
  0xc8   :  { %v163_v49 = vpack.c.bf16 %v127_v45, %v125_v44 }
  0xc9   :  { %v326_v48 = vadd.f32 %v325_v47, %v237_v46  ;;  %v162_v47 = vpack.c.bf16 %v126_v41, %v124_v40 }
  0xcb   :  { %v401_v52 = vmax.f32 %v326_v48, 0.0 }
  0xcd   :  { %v1090_v55 = vpack.c.bf16 %v401_v52, %v400_v51 }
  0xce   :  { %v239_v57 = vpop.f32.mrf.mxu0 }
  0xcf   :  { %1162 = vst [vmem:[#allocation2] sm:$0xff] %v1090_v55   ;;  %v328_v59 = vpop.f32.mrf.mxu1  ;;  %v240_v60 = vadd.f32 %v1344_v23, %v239_v57 }
  0xd1   :  { %278 = vmatmul.bf16.gmra.mxu0 %v156_v56  ;;  %v329_v63 = vadd.f32 %v328_v59, %v240_v60  ;;  %v130_v59 = vld [vmem:[#allocation3 + $0x1d0] sm:$0xff] }
  0xd2   :  { %367 = vmatmul.bf16.gmra.mxu1 %v157_v58  ;;  %v128_v58 = vld [vmem:[#allocation3 + $0x1c0] sm:$0xff] }
  0xd3   :  { %v402_v5 = vmax.f32 %v329_v63, 0.0  ;;  %v131_v63 = vld [vmem:[#allocation3 + $0x1d8] sm:$0xff] }
  0xd6   :  { %v241_v61 = vpop.f32.mrf.mxu0  ;;  %v1067_v62 = vld [vmem:[#allocation2] sm:$0xff] }
  0xd7   :  { %v242_v0 = vadd.f32 %v1344_v23, %v241_v61  ;;  %v330_v1 = vpop.f32.mrf.mxu1  ;;  %689 = vmatmul.bf16.gmra.mxu2 %v1067_v62  ;;  %778 = vmatmul.bf16.gmra.mxu3 %v1067_v62  ;;  %v129_v62 = vld [vmem:[#allocation3 + $0x1c8] sm:$0xff] }
  0xd8   :  { %v165_v3 = vpack.c.bf16 %v131_v63, %v129_v62 }
  0xd9   :  { %v331_v2 = vadd.f32 %v330_v1, %v242_v0  ;;  %v164_v1 = vpack.c.bf16 %v130_v59, %v128_v58 }
  0xdb   :  { %v403_v6 = vmax.f32 %v331_v2, 0.0 }
  0xdd   :  { %v1095_v9 = vpack.c.bf16 %v403_v6, %v402_v5 }
  0xde   :  { %v244_v11 = vpop.f32.mrf.mxu0 }
  0xdf   :  { %1163 = vst [vmem:[#allocation2 + $0x58] sm:$0xff] %v1095_v9   ;;  %v333_v13 = vpop.f32.mrf.mxu1  ;;  %v245_v14 = vadd.f32 %v1344_v23, %v244_v11 }
  0xe1   :  { %283 = vmatmul.bf16.gmra.mxu0 %v158_v10  ;;  %v334_v17 = vadd.f32 %v333_v13, %v245_v14  ;;  %v134_v13 = vld [vmem:[#allocation3 + $0x1f0] sm:$0xff] }
  0xe2   :  { %372 = vmatmul.bf16.gmra.mxu1 %v159_v12  ;;  %v132_v12 = vld [vmem:[#allocation3 + $0x1e0] sm:$0xff] }
  0xe3   :  { %v404_v24 = vmax.f32 %v334_v17, 0.0  ;;  %v135_v17 = vld [vmem:[#allocation3 + $0x1f8] sm:$0xff] }
  0xe6   :  { %v246_v15 = vpop.f32.mrf.mxu0  ;;  %v1068_v16 = vld [vmem:[#allocation2 + $0x58] sm:$0xff] }
  0xe7   :  { %v247_v18 = vadd.f32 %v1344_v23, %v246_v15  ;;  %v335_v19 = vpop.f32.mrf.mxu1  ;;  %694 = vmatmul.bf16.gmra.mxu2 %v1068_v16  ;;  %783 = vmatmul.bf16.gmra.mxu3 %v1068_v16  ;;  %v133_v16 = vld [vmem:[#allocation3 + $0x1e8] sm:$0xff] }
  0xe8   :  { %v167_v21 = vpack.c.bf16 %v135_v17, %v133_v16 }
  0xe9   :  { %v336_v20 = vadd.f32 %v335_v19, %v247_v18  ;;  %v166_v19 = vpack.c.bf16 %v134_v13, %v132_v12 }
  0xeb   :  { %v405_v25 = vmax.f32 %v336_v20, 0.0 }
  0xed   :  { %v1100_v28 = vpack.c.bf16 %v405_v25, %v404_v24 }
  0xee   :  { %v249_v30 = vpop.f32.mrf.mxu0 }
  0xef   :  { %1164 = vst [vmem:[#allocation2 + $0x18] sm:$0xff] %v1100_v28   ;;  %v338_v32 = vpop.f32.mrf.mxu1  ;;  %v250_v33 = vadd.f32 %v1344_v23, %v249_v30 }
  0xf1   :  { %288 = vmatmul.bf16.gmra.mxu0 %v160_v29  ;;  %v339_v36 = vadd.f32 %v338_v32, %v250_v33 }
  0xf2   :  { %377 = vmatmul.bf16.gmra.mxu1 %v161_v31 }
  0xf3   :  { %v406_v42 = vmax.f32 %v339_v36, 0.0 }
  0xf6   :  { %v251_v34 = vpop.f32.mrf.mxu0  ;;  %v1069_v35 = vld [vmem:[#allocation2 + $0x18] sm:$0xff] }
  0xf7   :  { %v252_v37 = vadd.f32 %v1344_v23, %v251_v34  ;;  %v340_v38 = vpop.f32.mrf.mxu1  ;;  %699 = vmatmul.bf16.gmra.mxu2 %v1069_v35  ;;  %788 = vmatmul.bf16.gmra.mxu3 %v1069_v35 }
  0xf9   :  { %v341_v39 = vadd.f32 %v340_v38, %v252_v37 }
  0xfb   :  { %v407_v43 = vmax.f32 %v341_v39, 0.0 }
  0xfd   :  { %v1105_v46 = vpack.c.bf16 %v407_v43, %v406_v42 }
  0xfe   :  { %v254_v48 = vpop.f32.mrf.mxu0 }
  0xff   :  { %1165 = vst [vmem:[#allocation2 + $0x50] sm:$0xff] %v1105_v46   ;;  %v343_v50 = vpop.f32.mrf.mxu1  ;;  %v255_v51 = vadd.f32 %v1344_v23, %v254_v48 }
 0x101   :  { %293 = vmatmul.bf16.gmra.mxu0 %v162_v47  ;;  %v344_v54 = vadd.f32 %v343_v50, %v255_v51 }
 0x102   :  { %382 = vmatmul.bf16.gmra.mxu1 %v163_v49  ;;  %v574_v49 = vld [vmem:[%s1459_s4] sm:$0x3]  ;;  %s1295_s4 = smov [#allocation9]  }
 0x103   :  { %v408_v60 = vmax.f32 %v344_v54, 0.0  ;;  %s986_s12 = sshll.u32 %s1295_s4, 4  ;;  %s987_s12 = int_to_ptr.vmem [resolvable:$true] %s986_s12 }
 0x106   :  { %v256_v52 = vpop.f32.mrf.mxu0  ;;  %v1070_v53 = vld [vmem:[#allocation2 + $0x50] sm:$0xff] }
 0x107   :  { %v257_v55 = vadd.f32 %v1344_v23, %v256_v52  ;;  %v345_v56 = vpop.f32.mrf.mxu1  ;;  %704 = vmatmul.bf16.gmra.mxu2 %v1070_v53  ;;  %793 = vmatmul.bf16.gmra.mxu3 %v1070_v53 }
 0x109   :  { %v346_v57 = vadd.f32 %v345_v56, %v257_v55  ;;  %v1369_v55 = vperm.slane %v574_v49, 0  ;;  %v1371_v56 = vperm.slane %v574_v49, 1 }
 0x10b   :  { %v409_v61 = vmax.f32 %v346_v57, 0.0 }
 0x10d   :  { %v1110_v0 = vpack.c.bf16 %v409_v61, %v408_v60 }
 0x10e   :  { %v259_v2 = vpop.f32.mrf.mxu0 }
 0x10f   :  { %1166 = vst [vmem:[#allocation2 + $0x68] sm:$0xff] %v1110_v0   ;;  %v348_v4 = vpop.f32.mrf.mxu1  ;;  %v260_v5 = vadd.f32 %v1344_v23, %v259_v2 }
 0x111   :  { %298 = vmatmul.bf16.gmra.mxu0 %v164_v1  ;;  %v349_v8 = vadd.f32 %v348_v4, %v260_v5 }
 0x112   :  { %387 = vmatmul.bf16.gmra.mxu1 %v165_v3 }
 0x113   :  { %v410_v14 = vmax.f32 %v349_v8, 0.0 }
 0x116   :  { %v261_v6 = vpop.f32.mrf.mxu0  ;;  %v1071_v7 = vld [vmem:[#allocation2 + $0x68] sm:$0xff] }
 0x117   :  { %v262_v9 = vadd.f32 %v1344_v23, %v261_v6  ;;  %v350_v10 = vpop.f32.mrf.mxu1  ;;  %709 = vmatmul.bf16.gmra.mxu2 %v1071_v7  ;;  %798 = vmatmul.bf16.gmra.mxu3 %v1071_v7 }
 0x119   :  { %v351_v11 = vadd.f32 %v350_v10, %v262_v9 }
 0x11b   :  { %v411_v15 = vmax.f32 %v351_v11, 0.0 }
 0x11d   :  { %v1115_v18 = vpack.c.bf16 %v411_v15, %v410_v14 }
 0x11e   :  { %v264_v20 = vpop.f32.mrf.mxu0 }
 0x11f   :  { %1167 = vst [vmem:[#allocation2 + $0x8] sm:$0xff] %v1115_v18   ;;  %v353_v22 = vpop.f32.mrf.mxu1  ;;  %v265_v24 = vadd.f32 %v1344_v23, %v264_v20 }
 0x121   :  { %303 = vmatmul.bf16.gmra.mxu0 %v166_v19  ;;  %v354_v27 = vadd.f32 %v353_v22, %v265_v24 }
 0x122   :  { %392 = vmatmul.bf16.gmra.mxu1 %v167_v21 }
 0x123   :  { %v412_v31 = vmax.f32 %v354_v27, 0.0 }
 0x126   :  { %v266_v25 = vpop.f32.mrf.mxu0  ;;  %v1072_v26 = vld [vmem:[#allocation2 + $0x8] sm:$0xff] }
 0x127   :  { %v267_v28 = vadd.f32 %v1344_v23, %v266_v25  ;;  %v355_v29 = vpop.f32.mrf.mxu1  ;;  %714 = vmatmul.bf16.gmra.mxu2 %v1072_v26  ;;  %803 = vmatmul.bf16.gmra.mxu3 %v1072_v26 }
 0x129   :  { %v356_v30 = vadd.f32 %v355_v29, %v267_v28 }
 0x12b   :  { %v413_v32 = vmax.f32 %v356_v30, 0.0 }
 0x12d   :  { %v1120_v33 = vpack.c.bf16 %v413_v32, %v412_v31 }
 0x12e   :  { %v269_v34 = vpop.f32.mrf.mxu0 }
 0x12f   :  { %1168 = vst [vmem:[#allocation2 + $0x48] sm:$0xff] %v1120_v33   ;;  %v358_v35 = vpop.f32.mrf.mxu1  ;;  %v270_v36 = vadd.f32 %v1344_v23, %v269_v34 }
 0x131   :  { %v359_v39 = vadd.f32 %v358_v35, %v270_v36 }
 0x133   :  { %v414_v43 = vmax.f32 %v359_v39, 0.0 }
 0x136   :  { %v271_v37 = vpop.f32.mrf.mxu0  ;;  %v1073_v38 = vld [vmem:[#allocation2 + $0x48] sm:$0xff] }
 0x137   :  { %v272_v40 = vadd.f32 %v1344_v23, %v271_v37  ;;  %v360_v41 = vpop.f32.mrf.mxu1  ;;  %719 = vmatmul.bf16.gmra.mxu2 %v1073_v38  ;;  %808 = vmatmul.bf16.gmra.mxu3 %v1073_v38 }
 0x139   :  { %v361_v42 = vadd.f32 %v360_v41, %v272_v40 }
 0x13b   :  { %v415_v44 = vmax.f32 %v361_v42, 0.0 }
 0x13d   :  { %v1125_v45 = vpack.c.bf16 %v415_v44, %v414_v43 }
 0x13e   :  { %v274_v46 = vpop.f32.mrf.mxu0 }
 0x13f   :  { %1169 = vst [vmem:[#allocation2 + $0x40] sm:$0xff] %v1125_v45   ;;  %v363_v47 = vpop.f32.mrf.mxu1  ;;  %v275_v48 = vadd.f32 %v1344_v23, %v274_v46 }
 0x141   :  { %v364_v52 = vadd.f32 %v363_v47, %v275_v48 }
 0x143   :  { %v416_v58 = vmax.f32 %v364_v52, 0.0 }
 0x146   :  { %v276_v50 = vpop.f32.mrf.mxu0  ;;  %v1074_v51 = vld [vmem:[#allocation2 + $0x40] sm:$0xff] }
 0x147   :  { %v277_v53 = vadd.f32 %v1344_v23, %v276_v50  ;;  %v365_v54 = vpop.f32.mrf.mxu1  ;;  %724 = vmatmul.bf16.gmra.mxu2 %v1074_v51  ;;  %813 = vmatmul.bf16.gmra.mxu3 %v1074_v51 }
 0x149   :  { %v366_v57 = vadd.f32 %v365_v54, %v277_v53 }
 0x14a   :  { %v685_v60 = vpop.f32.mrf.mxu2  ;;  %v774_v61 = vpop.f32.mrf.mxu3 }
 0x14b   :  { %v417_v59 = vmax.f32 %v366_v57, 0.0  ;;  %v686_v62 = vadd.f32 %v685_v60, %v1369_v55  ;;  %v775_v63 = vadd.f32 %v774_v61, %v1371_v56 }
 0x14d   :  { %v1130_v0 = vpack.c.bf16 %v417_v59, %v416_v58  ;;  %v854_v1 = vmax.f32 %v686_v62, 0.0  ;;  %v855_v2 = vmax.f32 %v775_v63, 0.0 }
 0x14e   :  { %v279_v3 = vpop.f32.mrf.mxu0 }
 0x14f   :  { %1170 = vst [vmem:[#allocation2 + $0x20] sm:$0xff] %v1130_v0   ;;  %v368_v4 = vpop.f32.mrf.mxu1  ;;  %v280_v5 = vadd.f32 %v1344_v23, %v279_v3 }
 0x150   :  { %918 = vst [vmem:[#allocation9] sm:$0xff] %v854_v1 }
 0x151   :  { %919 = vst [vmem:[#allocation9 + $0x8] sm:$0xff] %v855_v2  ;;  %v369_v14 = vadd.f32 %v368_v4, %v280_v5 }
 0x152   :  { %v687_v6 = vpop.f32.mrf.mxu2  ;;  %v776_v7 = vpop.f32.mrf.mxu3 }
 0x153   :  { %v688_v8 = vadd.f32 %v687_v6, %v1369_v55  ;;  %v777_v9 = vadd.f32 %v776_v7, %v1371_v56  ;;  %v418_v18 = vmax.f32 %v369_v14, 0.0 }
 0x155   :  { %v856_v10 = vmax.f32 %v688_v8, 0.0  ;;  %v857_v11 = vmax.f32 %v777_v9, 0.0 }
 0x156   :  { %v281_v12 = vpop.f32.mrf.mxu0  ;;  %v1075_v13 = vld [vmem:[#allocation2 + $0x20] sm:$0xff] }
 0x157   :  { %v282_v15 = vadd.f32 %v1344_v23, %v281_v12  ;;  %v370_v16 = vpop.f32.mrf.mxu1  ;;  %920 = vst [vmem:[#allocation9 + $0x10] sm:$0xff] %v856_v10  ;;  %729 = vmatmul.bf16.gmra.mxu2 %v1075_v13  ;;  %818 = vmatmul.bf16.gmra.mxu3 %v1075_v13 }
 0x158   :  { %921 = vst [vmem:[#allocation9 + $0x18] sm:$0xff] %v857_v11 }
 0x159   :  { %v371_v17 = vadd.f32 %v370_v16, %v282_v15 }
 0x15a   :  { %v690_v20 = vpop.f32.mrf.mxu2  ;;  %v779_v21 = vpop.f32.mrf.mxu3 }
 0x15b   :  { %v419_v19 = vmax.f32 %v371_v17, 0.0  ;;  %v691_v22 = vadd.f32 %v690_v20, %v1369_v55  ;;  %v780_v24 = vadd.f32 %v779_v21, %v1371_v56 }
 0x15d   :  { %v1135_v25 = vpack.c.bf16 %v419_v19, %v418_v18  ;;  %v858_v26 = vmax.f32 %v691_v22, 0.0  ;;  %v859_v27 = vmax.f32 %v780_v24, 0.0 }
 0x15e   :  { %v284_v28 = vpop.f32.mrf.mxu0 }
 0x15f   :  { %1171 = vst [vmem:[#allocation2 + $0x10] sm:$0xff] %v1135_v25   ;;  %v373_v29 = vpop.f32.mrf.mxu1  ;;  %v285_v30 = vadd.f32 %v1344_v23, %v284_v28 }
 0x160   :  { %922 = vst [vmem:[#allocation9 + $0x20] sm:$0xff] %v858_v26 }
 0x161   :  { %923 = vst [vmem:[#allocation9 + $0x28] sm:$0xff] %v859_v27  ;;  %v374_v39 = vadd.f32 %v373_v29, %v285_v30 }
 0x162   :  { %v692_v31 = vpop.f32.mrf.mxu2  ;;  %v781_v32 = vpop.f32.mrf.mxu3 }
 0x163   :  { %v693_v33 = vadd.f32 %v692_v31, %v1369_v55  ;;  %v782_v34 = vadd.f32 %v781_v32, %v1371_v56  ;;  %v420_v43 = vmax.f32 %v374_v39, 0.0 }
 0x165   :  { %v860_v35 = vmax.f32 %v693_v33, 0.0  ;;  %v861_v36 = vmax.f32 %v782_v34, 0.0 }
 0x166   :  { %v286_v37 = vpop.f32.mrf.mxu0  ;;  %v1076_v38 = vld [vmem:[#allocation2 + $0x10] sm:$0xff] }
 0x167   :  { %v287_v40 = vadd.f32 %v1344_v23, %v286_v37  ;;  %v375_v41 = vpop.f32.mrf.mxu1  ;;  %924 = vst [vmem:[#allocation9 + $0x30] sm:$0xff] %v860_v35  ;;  %734 = vmatmul.bf16.gmra.mxu2 %v1076_v38  ;;  %823 = vmatmul.bf16.gmra.mxu3 %v1076_v38 }
 0x168   :  { %925 = vst [vmem:[#allocation9 + $0x38] sm:$0xff] %v861_v36 }
 0x169   :  { %v376_v42 = vadd.f32 %v375_v41, %v287_v40 }
 0x16a   :  { %v695_v45 = vpop.f32.mrf.mxu2  ;;  %v784_v46 = vpop.f32.mrf.mxu3 }
 0x16b   :  { %v421_v44 = vmax.f32 %v376_v42, 0.0  ;;  %v696_v47 = vadd.f32 %v695_v45, %v1369_v55  ;;  %v785_v48 = vadd.f32 %v784_v46, %v1371_v56 }
 0x16d   :  { %v1140_v49 = vpack.c.bf16 %v421_v44, %v420_v43  ;;  %v862_v50 = vmax.f32 %v696_v47, 0.0  ;;  %v863_v51 = vmax.f32 %v785_v48, 0.0 }
 0x16e   :  { %v289_v52 = vpop.f32.mrf.mxu0 }
 0x16f   :  { %1172 = vst [vmem:[#allocation2 + $0x38] sm:$0xff] %v1140_v49   ;;  %v378_v53 = vpop.f32.mrf.mxu1  ;;  %v290_v54 = vadd.f32 %v1344_v23, %v289_v52 }
 0x170   :  { %926 = vst [vmem:[#allocation9 + $0x40] sm:$0xff] %v862_v50 }
 0x171   :  { %927 = vst [vmem:[#allocation9 + $0x48] sm:$0xff] %v863_v51  ;;  %v379_v1 = vadd.f32 %v378_v53, %v290_v54 }
 0x172   :  { %v697_v57 = vpop.f32.mrf.mxu2  ;;  %v786_v58 = vpop.f32.mrf.mxu3 }
 0x173   :  { %v698_v59 = vadd.f32 %v697_v57, %v1369_v55  ;;  %v787_v60 = vadd.f32 %v786_v58, %v1371_v56  ;;  %v422_v5 = vmax.f32 %v379_v1, 0.0 }
 0x175   :  { %v864_v61 = vmax.f32 %v698_v59, 0.0  ;;  %v865_v62 = vmax.f32 %v787_v60, 0.0 }
 0x176   :  { %v291_v63 = vpop.f32.mrf.mxu0  ;;  %v1077_v0 = vld [vmem:[#allocation2 + $0x38] sm:$0xff] }
 0x177   :  { %v292_v2 = vadd.f32 %v1344_v23, %v291_v63  ;;  %v380_v3 = vpop.f32.mrf.mxu1  ;;  %928 = vst [vmem:[#allocation9 + $0x50] sm:$0xff] %v864_v61  ;;  %739 = vmatmul.bf16.gmra.mxu2 %v1077_v0  ;;  %828 = vmatmul.bf16.gmra.mxu3 %v1077_v0 }
 0x178   :  { %929 = vst [vmem:[#allocation9 + $0x58] sm:$0xff] %v865_v62 }
 0x179   :  { %v381_v4 = vadd.f32 %v380_v3, %v292_v2 }
 0x17a   :  { %v700_v7 = vpop.f32.mrf.mxu2  ;;  %v789_v8 = vpop.f32.mrf.mxu3 }
 0x17b   :  { %v423_v6 = vmax.f32 %v381_v4, 0.0  ;;  %v701_v9 = vadd.f32 %v700_v7, %v1369_v55  ;;  %v790_v10 = vadd.f32 %v789_v8, %v1371_v56 }
 0x17d   :  { %v1145_v11 = vpack.c.bf16 %v423_v6, %v422_v5  ;;  %v866_v12 = vmax.f32 %v701_v9, 0.0  ;;  %v867_v13 = vmax.f32 %v790_v10, 0.0 }
 0x17e   :  { %v294_v14 = vpop.f32.mrf.mxu0 }
 0x17f   :  { %1173 = vst [vmem:[#allocation2 + $0x60] sm:$0xff] %v1145_v11   ;;  %v383_v15 = vpop.f32.mrf.mxu1  ;;  %v295_v16 = vadd.f32 %v1344_v23, %v294_v14 }
 0x180   :  { %930 = vst [vmem:[#allocation9 + $0x60] sm:$0xff] %v866_v12 }
 0x181   :  { %931 = vst [vmem:[#allocation9 + $0x68] sm:$0xff] %v867_v13  ;;  %v384_v26 = vadd.f32 %v383_v15, %v295_v16 }
 0x182   :  { %v702_v17 = vpop.f32.mrf.mxu2  ;;  %v791_v18 = vpop.f32.mrf.mxu3 }
 0x183   :  { %v703_v19 = vadd.f32 %v702_v17, %v1369_v55  ;;  %v792_v20 = vadd.f32 %v791_v18, %v1371_v56  ;;  %v424_v30 = vmax.f32 %v384_v26, 0.0 }
 0x185   :  { %v868_v21 = vmax.f32 %v703_v19, 0.0  ;;  %v869_v22 = vmax.f32 %v792_v20, 0.0 }
 0x186   :  { %v296_v24 = vpop.f32.mrf.mxu0  ;;  %v1078_v25 = vld [vmem:[#allocation2 + $0x60] sm:$0xff] }
 0x187   :  { %v297_v27 = vadd.f32 %v1344_v23, %v296_v24  ;;  %v385_v28 = vpop.f32.mrf.mxu1  ;;  %932 = vst [vmem:[#allocation9 + $0x70] sm:$0xff] %v868_v21  ;;  %744 = vmatmul.bf16.gmra.mxu2 %v1078_v25  ;;  %833 = vmatmul.bf16.gmra.mxu3 %v1078_v25 }
 0x188   :  { %933 = vst [vmem:[#allocation9 + $0x78] sm:$0xff] %v869_v22 }
 0x189   :  { %v386_v29 = vadd.f32 %v385_v28, %v297_v27 }
 0x18a   :  { %v705_v32 = vpop.f32.mrf.mxu2  ;;  %v794_v33 = vpop.f32.mrf.mxu3 }
 0x18b   :  { %v425_v31 = vmax.f32 %v386_v29, 0.0  ;;  %v706_v34 = vadd.f32 %v705_v32, %v1369_v55  ;;  %v795_v35 = vadd.f32 %v794_v33, %v1371_v56 }
 0x18d   :  { %v1150_v36 = vpack.c.bf16 %v425_v31, %v424_v30  ;;  %v870_v37 = vmax.f32 %v706_v34, 0.0  ;;  %v871_v38 = vmax.f32 %v795_v35, 0.0 }
 0x18e   :  { %v299_v39 = vpop.f32.mrf.mxu0 }
 0x18f   :  { %1174 = vst [vmem:[#allocation2 + $0x70] sm:$0xff] %v1150_v36   ;;  %v388_v40 = vpop.f32.mrf.mxu1  ;;  %v300_v41 = vadd.f32 %v1344_v23, %v299_v39 }
 0x190   :  { %934 = vst [vmem:[#allocation9 + $0x80] sm:$0xff] %v870_v37 }
 0x191   :  { %935 = vst [vmem:[#allocation9 + $0x88] sm:$0xff] %v871_v38  ;;  %v389_v50 = vadd.f32 %v388_v40, %v300_v41 }
 0x192   :  { %v707_v42 = vpop.f32.mrf.mxu2  ;;  %v796_v43 = vpop.f32.mrf.mxu3 }
 0x193   :  { %v708_v44 = vadd.f32 %v707_v42, %v1369_v55  ;;  %v797_v45 = vadd.f32 %v796_v43, %v1371_v56  ;;  %v426_v54 = vmax.f32 %v389_v50, 0.0 }
 0x195   :  { %v872_v46 = vmax.f32 %v708_v44, 0.0  ;;  %v873_v47 = vmax.f32 %v797_v45, 0.0 }
 0x196   :  { %v301_v48 = vpop.f32.mrf.mxu0  ;;  %v1079_v49 = vld [vmem:[#allocation2 + $0x70] sm:$0xff] }
 0x197   :  { %v302_v51 = vadd.f32 %v1344_v23, %v301_v48  ;;  %v390_v52 = vpop.f32.mrf.mxu1  ;;  %936 = vst [vmem:[#allocation9 + $0x90] sm:$0xff] %v872_v46  ;;  %749 = vmatmul.bf16.gmra.mxu2 %v1079_v49  ;;  %838 = vmatmul.bf16.gmra.mxu3 %v1079_v49 }
 0x198   :  { %937 = vst [vmem:[#allocation9 + $0x98] sm:$0xff] %v873_v47 }
 0x199   :  { %v391_v53 = vadd.f32 %v390_v52, %v302_v51 }
 0x19a   :  { %v710_v58 = vpop.f32.mrf.mxu2  ;;  %v799_v59 = vpop.f32.mrf.mxu3 }
 0x19b   :  { %v427_v57 = vmax.f32 %v391_v53, 0.0  ;;  %v711_v60 = vadd.f32 %v710_v58, %v1369_v55  ;;  %v800_v61 = vadd.f32 %v799_v59, %v1371_v56 }
 0x19d   :  { %v1155_v62 = vpack.c.bf16 %v427_v57, %v426_v54  ;;  %v874_v63 = vmax.f32 %v711_v60, 0.0  ;;  %v875_v0 = vmax.f32 %v800_v61, 0.0 }
 0x19e   :  { %v304_v1 = vpop.f32.mrf.mxu0 }
 0x19f   :  { %1175 = vst [vmem:[#allocation2 + $0x78] sm:$0xff] %v1155_v62   ;;  %v393_v2 = vpop.f32.mrf.mxu1  ;;  %v305_v3 = vadd.f32 %v1344_v23, %v304_v1 }
 0x1a0   :  { %938 = vst [vmem:[#allocation9 + $0xa0] sm:$0xff] %v874_v63 }
 0x1a1   :  { %939 = vst [vmem:[#allocation9 + $0xa8] sm:$0xff] %v875_v0  ;;  %v394_v12 = vadd.f32 %v393_v2, %v305_v3 }
 0x1a2   :  { %v712_v4 = vpop.f32.mrf.mxu2  ;;  %v801_v5 = vpop.f32.mrf.mxu3 }
 0x1a3   :  { %v713_v6 = vadd.f32 %v712_v4, %v1369_v55  ;;  %v802_v7 = vadd.f32 %v801_v5, %v1371_v56  ;;  %v428_v16 = vmax.f32 %v394_v12, 0.0 }
 0x1a5   :  { %v876_v8 = vmax.f32 %v713_v6, 0.0  ;;  %v877_v9 = vmax.f32 %v802_v7, 0.0 }
 0x1a6   :  { %v306_v10 = vpop.f32.mrf.mxu0  ;;  %v1080_v11 = vld [vmem:[#allocation2 + $0x78] sm:$0xff] }
 0x1a7   :  { %v307_v13 = vadd.f32 %v1344_v23, %v306_v10  ;;  %940 = vst [vmem:[#allocation9 + $0xb0] sm:$0xff] %v876_v8  ;;  %v395_v14 = vpop.f32.mrf.mxu1  ;;  %754 = vmatmul.bf16.gmra.mxu2 %v1080_v11  ;;  %843 = vmatmul.bf16.gmra.mxu3 %v1080_v11 }
 0x1a8   :  { %941 = vst [vmem:[#allocation9 + $0xb8] sm:$0xff] %v877_v9 }
 0x1a9   :  { %v396_v15 = vadd.f32 %v395_v14, %v307_v13 }
 0x1aa   :  { %v715_v18 = vpop.f32.mrf.mxu2  ;;  %v804_v19 = vpop.f32.mrf.mxu3 }
 0x1ab   :  { %v429_v17 = vmax.f32 %v396_v15, 0.0  ;;  %v716_v20 = vadd.f32 %v715_v18, %v1369_v55  ;;  %v805_v21 = vadd.f32 %v804_v19, %v1371_v56 }
 0x1ad   :  { %v1160_v22 = vpack.c.bf16 %v429_v17, %v428_v16  ;;  %v878_v24 = vmax.f32 %v716_v20, 0.0  ;;  %v879_v25 = vmax.f32 %v805_v21, 0.0 }
 0x1af   :  { %1176 = vst [vmem:[#allocation2 + $0x28] sm:$0xff] %v1160_v22  }
 0x1b0   :  { %942 = vst [vmem:[#allocation9 + $0xc0] sm:$0xff] %v878_v24 }
 0x1b1   :  { %943 = vst [vmem:[#allocation9 + $0xc8] sm:$0xff] %v879_v25 }
 0x1b2   :  { %v717_v23 = vpop.f32.mrf.mxu2  ;;  %v806_v26 = vpop.f32.mrf.mxu3 }
 0x1b3   :  { %v718_v27 = vadd.f32 %v717_v23, %v1369_v55  ;;  %v807_v28 = vadd.f32 %v806_v26, %v1371_v56 }
 0x1b5   :  { %v880_v29 = vmax.f32 %v718_v27, 0.0  ;;  %v881_v30 = vmax.f32 %v807_v28, 0.0 }
 0x1b6   :  { %v1081_v31 = vld [vmem:[#allocation2 + $0x28] sm:$0xff] }
 0x1b7   :  { %944 = vst [vmem:[#allocation9 + $0xd0] sm:$0xff] %v880_v29  ;;  %759 = vmatmul.bf16.gmra.mxu2 %v1081_v31  ;;  %848 = vmatmul.bf16.gmra.mxu3 %v1081_v31 }
 0x1b8   :  { %945 = vst [vmem:[#allocation9 + $0xd8] sm:$0xff] %v881_v30 }
 0x1ba   :  { %v720_v32 = vpop.f32.mrf.mxu2  ;;  %v809_v33 = vpop.f32.mrf.mxu3 }
 0x1bb   :  { %v721_v34 = vadd.f32 %v720_v32, %v1369_v55  ;;  %v810_v35 = vadd.f32 %v809_v33, %v1371_v56 }
 0x1bd   :  { %v882_v36 = vmax.f32 %v721_v34, 0.0  ;;  %v883_v37 = vmax.f32 %v810_v35, 0.0 }
 0x1bf   :  { %946 = vst [vmem:[#allocation9 + $0xe0] sm:$0xff] %v882_v36 }
 0x1c0   :  { %947 = vst [vmem:[#allocation9 + $0xe8] sm:$0xff] %v883_v37 }
 0x1c2   :  { %v722_v38 = vpop.f32.mrf.mxu2  ;;  %v811_v39 = vpop.f32.mrf.mxu3 }
 0x1c3   :  { %v723_v40 = vadd.f32 %v722_v38, %v1369_v55  ;;  %v812_v41 = vadd.f32 %v811_v39, %v1371_v56 }
 0x1c5   :  { %v884_v42 = vmax.f32 %v723_v40, 0.0  ;;  %v885_v43 = vmax.f32 %v812_v41, 0.0 }
 0x1c7   :  { %948 = vst [vmem:[#allocation9 + $0xf0] sm:$0xff] %v884_v42 }
 0x1c8   :  { %949 = vst [vmem:[#allocation9 + $0xf8] sm:$0xff] %v885_v43 }
 0x1ca   :  { %v725_v44 = vpop.f32.mrf.mxu2  ;;  %v814_v45 = vpop.f32.mrf.mxu3 }
 0x1cb   :  { %v726_v46 = vadd.f32 %v725_v44, %v1369_v55  ;;  %v815_v47 = vadd.f32 %v814_v45, %v1371_v56 }
 0x1cd   :  { %v886_v48 = vmax.f32 %v726_v46, 0.0  ;;  %v887_v49 = vmax.f32 %v815_v47, 0.0 }
 0x1cf   :  { %950 = vst [vmem:[#allocation9 + $0x100] sm:$0xff] %v886_v48 }
 0x1d0   :  { %951 = vst [vmem:[#allocation9 + $0x108] sm:$0xff] %v887_v49 }
 0x1d2   :  { %v727_v50 = vpop.f32.mrf.mxu2  ;;  %v816_v51 = vpop.f32.mrf.mxu3 }
 0x1d3   :  { %v728_v52 = vadd.f32 %v727_v50, %v1369_v55  ;;  %v817_v53 = vadd.f32 %v816_v51, %v1371_v56 }
 0x1d5   :  { %v888_v54 = vmax.f32 %v728_v52, 0.0  ;;  %v889_v57 = vmax.f32 %v817_v53, 0.0 }
 0x1d7   :  { %952 = vst [vmem:[#allocation9 + $0x110] sm:$0xff] %v888_v54 }
 0x1d8   :  { %953 = vst [vmem:[#allocation9 + $0x118] sm:$0xff] %v889_v57 }
 0x1da   :  { %v730_v58 = vpop.f32.mrf.mxu2  ;;  %v819_v59 = vpop.f32.mrf.mxu3 }
 0x1db   :  { %v731_v60 = vadd.f32 %v730_v58, %v1369_v55  ;;  %v820_v61 = vadd.f32 %v819_v59, %v1371_v56 }
 0x1dd   :  { %v890_v62 = vmax.f32 %v731_v60, 0.0  ;;  %v891_v63 = vmax.f32 %v820_v61, 0.0 }
 0x1df   :  { %954 = vst [vmem:[#allocation9 + $0x120] sm:$0xff] %v890_v62 }
 0x1e0   :  { %955 = vst [vmem:[#allocation9 + $0x128] sm:$0xff] %v891_v63 }
 0x1e2   :  { %v732_v0 = vpop.f32.mrf.mxu2  ;;  %v821_v1 = vpop.f32.mrf.mxu3 }
 0x1e3   :  { %v733_v2 = vadd.f32 %v732_v0, %v1369_v55  ;;  %v822_v3 = vadd.f32 %v821_v1, %v1371_v56 }
 0x1e5   :  { %v892_v4 = vmax.f32 %v733_v2, 0.0  ;;  %v893_v5 = vmax.f32 %v822_v3, 0.0 }
 0x1e7   :  { %956 = vst [vmem:[#allocation9 + $0x130] sm:$0xff] %v892_v4 }
 0x1e8   :  { %957 = vst [vmem:[#allocation9 + $0x138] sm:$0xff] %v893_v5 }
 0x1ea   :  { %v735_v6 = vpop.f32.mrf.mxu2  ;;  %v824_v7 = vpop.f32.mrf.mxu3 }
 0x1eb   :  { %v736_v8 = vadd.f32 %v735_v6, %v1369_v55  ;;  %v825_v9 = vadd.f32 %v824_v7, %v1371_v56 }
 0x1ed   :  { %v894_v10 = vmax.f32 %v736_v8, 0.0  ;;  %v895_v11 = vmax.f32 %v825_v9, 0.0 }
 0x1ef   :  { %958 = vst [vmem:[#allocation9 + $0x140] sm:$0xff] %v894_v10 }
 0x1f0   :  { %959 = vst [vmem:[#allocation9 + $0x148] sm:$0xff] %v895_v11 }
 0x1f2   :  { %v737_v12 = vpop.f32.mrf.mxu2  ;;  %v826_v13 = vpop.f32.mrf.mxu3 }
 0x1f3   :  { %v738_v14 = vadd.f32 %v737_v12, %v1369_v55  ;;  %v827_v15 = vadd.f32 %v826_v13, %v1371_v56 }
 0x1f5   :  { %v896_v16 = vmax.f32 %v738_v14, 0.0  ;;  %v897_v17 = vmax.f32 %v827_v15, 0.0 }
 0x1f7   :  { %960 = vst [vmem:[#allocation9 + $0x150] sm:$0xff] %v896_v16 }
 0x1f8   :  { %961 = vst [vmem:[#allocation9 + $0x158] sm:$0xff] %v897_v17 }
 0x1fa   :  { %v740_v18 = vpop.f32.mrf.mxu2  ;;  %v829_v19 = vpop.f32.mrf.mxu3 }
 0x1fb   :  { %v741_v20 = vadd.f32 %v740_v18, %v1369_v55  ;;  %v830_v21 = vadd.f32 %v829_v19, %v1371_v56 }
 0x1fd   :  { %v898_v22 = vmax.f32 %v741_v20, 0.0  ;;  %v899_v24 = vmax.f32 %v830_v21, 0.0 }
 0x1ff   :  { %962 = vst [vmem:[#allocation9 + $0x160] sm:$0xff] %v898_v22 }
 0x200   :  { %963 = vst [vmem:[#allocation9 + $0x168] sm:$0xff] %v899_v24 }
 0x202   :  { %v742_v25 = vpop.f32.mrf.mxu2  ;;  %v831_v23 = vpop.f32.mrf.mxu3 }
 0x203   :  { %v743_v26 = vadd.f32 %v742_v25, %v1369_v55  ;;  %v832_v27 = vadd.f32 %v831_v23, %v1371_v56 }
 0x205   :  { %v900_v28 = vmax.f32 %v743_v26, 0.0  ;;  %v901_v29 = vmax.f32 %v832_v27, 0.0 }
 0x207   :  { %964 = vst [vmem:[#allocation9 + $0x170] sm:$0xff] %v900_v28 }
 0x208   :  { %965 = vst [vmem:[#allocation9 + $0x178] sm:$0xff] %v901_v29 }
 0x20a   :  { %v745_v30 = vpop.f32.mrf.mxu2  ;;  %v834_v31 = vpop.f32.mrf.mxu3 }
 0x20b   :  { %v746_v32 = vadd.f32 %v745_v30, %v1369_v55  ;;  %v835_v33 = vadd.f32 %v834_v31, %v1371_v56 }
 0x20d   :  { %v902_v34 = vmax.f32 %v746_v32, 0.0  ;;  %v903_v35 = vmax.f32 %v835_v33, 0.0 }
 0x20f   :  { %966 = vst [vmem:[#allocation9 + $0x180] sm:$0xff] %v902_v34 }
 0x210   :  { %967 = vst [vmem:[#allocation9 + $0x188] sm:$0xff] %v903_v35 }
 0x212   :  { %v747_v36 = vpop.f32.mrf.mxu2  ;;  %v836_v37 = vpop.f32.mrf.mxu3 }
 0x213   :  { %v748_v38 = vadd.f32 %v747_v36, %v1369_v55  ;;  %v837_v39 = vadd.f32 %v836_v37, %v1371_v56 }
 0x215   :  { %v904_v40 = vmax.f32 %v748_v38, 0.0  ;;  %v905_v41 = vmax.f32 %v837_v39, 0.0 }
 0x217   :  { %968 = vst [vmem:[#allocation9 + $0x190] sm:$0xff] %v904_v40 }
 0x218   :  { %969 = vst [vmem:[#allocation9 + $0x198] sm:$0xff] %v905_v41 }
 0x21a   :  { %v750_v42 = vpop.f32.mrf.mxu2  ;;  %v839_v43 = vpop.f32.mrf.mxu3 }
 0x21b   :  { %v751_v44 = vadd.f32 %v750_v42, %v1369_v55  ;;  %v840_v45 = vadd.f32 %v839_v43, %v1371_v56 }
 0x21d   :  { %v906_v46 = vmax.f32 %v751_v44, 0.0  ;;  %v907_v47 = vmax.f32 %v840_v45, 0.0 }
 0x21f   :  { %970 = vst [vmem:[#allocation9 + $0x1a0] sm:$0xff] %v906_v46 }
 0x220   :  { %971 = vst [vmem:[#allocation9 + $0x1a8] sm:$0xff] %v907_v47 }
 0x222   :  { %v752_v48 = vpop.f32.mrf.mxu2  ;;  %v841_v49 = vpop.f32.mrf.mxu3 }
 0x223   :  { %v753_v50 = vadd.f32 %v752_v48, %v1369_v55  ;;  %v842_v51 = vadd.f32 %v841_v49, %v1371_v56 }
 0x225   :  { %v908_v52 = vmax.f32 %v753_v50, 0.0  ;;  %v909_v53 = vmax.f32 %v842_v51, 0.0 }
 0x227   :  { %972 = vst [vmem:[#allocation9 + $0x1b0] sm:$0xff] %v908_v52 }
 0x228   :  { %973 = vst [vmem:[#allocation9 + $0x1b8] sm:$0xff] %v909_v53 }
 0x22a   :  { %v755_v54 = vpop.f32.mrf.mxu2  ;;  %v844_v57 = vpop.f32.mrf.mxu3 }
 0x22b   :  { %v756_v58 = vadd.f32 %v755_v54, %v1369_v55  ;;  %v845_v59 = vadd.f32 %v844_v57, %v1371_v56 }
 0x22d   :  { %v910_v60 = vmax.f32 %v756_v58, 0.0  ;;  %v911_v61 = vmax.f32 %v845_v59, 0.0 }
 0x22f   :  { %974 = vst [vmem:[#allocation9 + $0x1c0] sm:$0xff] %v910_v60 }
 0x230   :  { %975 = vst [vmem:[#allocation9 + $0x1c8] sm:$0xff] %v911_v61 }
 0x232   :  { %v757_v62 = vpop.f32.mrf.mxu2  ;;  %v846_v63 = vpop.f32.mrf.mxu3 }
 0x233   :  { %v758_v0 = vadd.f32 %v757_v62, %v1369_v55  ;;  %v847_v1 = vadd.f32 %v846_v63, %v1371_v56 }
 0x235   :  { %v912_v2 = vmax.f32 %v758_v0, 0.0  ;;  %v913_v3 = vmax.f32 %v847_v1, 0.0 }
 0x237   :  { %976 = vst [vmem:[#allocation9 + $0x1d0] sm:$0xff] %v912_v2 }
 0x238   :  { %977 = vst [vmem:[#allocation9 + $0x1d8] sm:$0xff] %v913_v3 }
 0x23a   :  { %v760_v4 = vpop.f32.mrf.mxu2  ;;  %v849_v5 = vpop.f32.mrf.mxu3 }
 0x23b   :  { %v761_v6 = vadd.f32 %v760_v4, %v1369_v55  ;;  %v850_v7 = vadd.f32 %v849_v5, %v1371_v56 }
 0x23d   :  { %v914_v8 = vmax.f32 %v761_v6, 0.0  ;;  %v915_v9 = vmax.f32 %v850_v7, 0.0 }
 0x23f   :  { %978 = vst [vmem:[#allocation9 + $0x1e0] sm:$0xff] %v914_v8 }
 0x240   :  { %979 = vst [vmem:[#allocation9 + $0x1e8] sm:$0xff] %v915_v9 }
 0x242   :  { %v762_v10 = vpop.f32.mrf.mxu2  ;;  %v851_v11 = vpop.f32.mrf.mxu3 }
 0x243   :  { %v763_v12 = vadd.f32 %v762_v10, %v1369_v55  ;;  %v852_v13 = vadd.f32 %v851_v11, %v1371_v56 }
 0x245   :  { %v916_v14 = vmax.f32 %v763_v12, 0.0  ;;  %v917_v15 = vmax.f32 %v852_v13, 0.0 }
 0x247   :  { %980 = vst [vmem:[#allocation9 + $0x1f0] sm:$0xff] %v916_v14 }
 0x248   :  { %981 = vst [vmem:[#allocation9 + $0x1f8] sm:$0xff] %v917_v15 }
 0x249   :  { %994 = dma.vmem_to_hbm [thread:$0]  %s987_s12, 8192, %s989_s15, [#allocation5], %s1292_s30, %s1292_s30, %s1293_s6  }
 0x24a   :  { %1286 = dma.done.wait [#allocation5], 8192  }
 0x24b   :  { %1287 = vsyncadd [#allocation5], 4294959104 }
 0x24c   :  { %999 = vsyncpa [#allocation4], 1 }
 0x24d   :  { %1000 = vsyncpa [#allocation7], 1 }
 0x24e   :  { %1001 = vsyncpa [#allocation5], 1 }

</bundles_post_ra>
